<compile_context>
chip_gen: v5e
topology: v5e:2x2
jax: 0.10.0
libtpu: 0.0.40
codegen_flags: <defaults>
</compile_context>

<pallas_src>
import functools

import jax
import jax.numpy as jnp
from jax import lax
from jax.experimental import pallas as pl
from jax.experimental.pallas import tpu as pltpu


def _round_up(x: int, m: int) -> int:
    return ((x + m - 1) // m) * m


def _pad2d(a, rows: int, cols: int):
    return jnp.pad(a, ((0, rows - a.shape[0]), (0, cols - a.shape[1])))


def make_rnn_kernel(n_layers: int, seq_len: int, batch_p: int):
    """Builds a Pallas kernel closure for fixed (n_layers, seq_len, padded batch)."""
    n_extra = n_layers - 1

    def kernel(*refs):
        # ---- inputs ----
        x2d_ref = refs[0]                              # (seq*batch_p, input_size)
        w_in0_ref = refs[1]                            # (input_size, hidden_p)  = W_ih0^T (padded)
        b0_ref = refs[2]                               # (1, hidden_p)           = b_ih0 + b_hh0
        w_hh0_ref = refs[3]                            # (hidden_p, hidden_p)    = W_hh0^T
        w_cat_refs = refs[4:4 + n_extra]               # (2*hidden_p, hidden_p)  = [W_ihL^T ; W_hhL^T]
        b_cat_refs = refs[4 + n_extra:4 + 2 * n_extra] # (1, hidden_p)           = b_ihL + b_hhL
        w_fc_ref = refs[4 + 2 * n_extra]               # (hidden_p, output_size)
        b_fc_ref = refs[5 + 2 * n_extra]               # (1, output_size)
        # ---- outputs ----
        out_ref = refs[6 + 2 * n_extra]                # (seq*batch_p, output_size)
        h_out_ref = refs[7 + 2 * n_extra]              # (n_layers, batch_p, hidden_p)
        # ---- scratch (VMEM) ----
        xproj = refs[8 + 2 * n_extra]                  # (seq*batch_p, hidden_p)
        h_scr = refs[9 + 2 * n_extra]                  # (n_layers, batch_p, hidden_p)
        seqh = refs[10 + 2 * n_extra]                  # (seq*batch_p, hidden_p)

        # Hoist loop-invariant weight / bias loads out of the recurrence
        # (JAX does not CSE these if left inside the loop body).
        w_hh0 = w_hh0_ref[...]
        w_cats = [r[...] for r in w_cat_refs]
        b_cats = [r[...] for r in b_cat_refs]

        # hidden = zeros(n_layers, batch, hidden)  (init_hidden)
        h_scr[...] = jnp.zeros_like(h_scr)

        # Time-invariant layer-0 input projection for ALL timesteps: one matmul,
        # with the layer-0 biases folded in.
        xproj[...] = (
            jnp.dot(x2d_ref[...], w_in0_ref[...],
                    preferred_element_type=jnp.float32)
            + b0_ref[...]
        )

        def step(t, carry):
            row = pl.multiple_of(t * batch_p, 8)
            # Layer 0: only the recurrent matmul remains on the serial chain.
            h0 = jnp.tanh(
                xproj[pl.ds(row, batch_p), :]
                + jnp.dot(h_scr[0], w_hh0, preferred_element_type=jnp.float32)
            )
            h_scr[0] = h0
            layer_in = h0
            # Layers >= 1: single fused matmul per layer ([x, h] @ [Wih^T; Whh^T]).
            for l in range(1, n_layers):
                cat = jnp.concatenate([layer_in, h_scr[l]], axis=-1)
                hl = jnp.tanh(
                    jnp.dot(cat, w_cats[l - 1],
                            preferred_element_type=jnp.float32)
                    + b_cats[l - 1]
                )
                h_scr[l] = hl
                layer_in = hl
            # Stash last-layer output; FC + sigmoid happen once after the loop.
            seqh[pl.ds(row, batch_p), :] = layer_in
            return carry

        # Static trip count -> fully unroll for LLO scheduling visibility.
        lax.fori_loop(0, seq_len, step, 0, unroll=True)

        # FC head + sigmoid once over the whole (seq*batch, hidden) slab.
        logits = (
            jnp.dot(seqh[...], w_fc_ref[...], preferred_element_type=jnp.float32)
            + b_fc_ref[...]
        )
        out_ref[...] = jax.nn.sigmoid(logits)
        h_out_ref[...] = h_scr[...]

    return kernel


def basic_rnn_forward(x, params, *, n_layers, hidden_dim, output_size):
    """Wrapper: pads to tile-friendly sizes, fuses weights, calls the kernel once."""
    seq_len, batch, input_size = x.shape
    batch_p = _round_up(batch, 8)       # sublane-aligned batch
    hidden_p = _round_up(hidden_dim, 128)  # lane-aligned hidden

    if batch_p != batch:
        x = jnp.pad(x, ((0, 0), (0, batch_p - batch), (0, 0)))
    x2d = x.reshape(seq_len * batch_p, input_size)

    # Layer 0: transposed + zero-padded input projection weights, pre-summed bias.
    w_in0 = _pad2d(jnp.transpose(params["w_ih"][0]), input_size, hidden_p)
    w_hh0 = _pad2d(jnp.transpose(params["w_hh"][0]), hidden_p, hidden_p)
    b0 = _pad2d((params["b_ih"][0] + params["b_hh"][0]).reshape(1, hidden_dim),
                1, hidden_p)
    # Layers >= 1: fused [W_ih^T ; W_hh^T] (K = 2*hidden_p) and pre-summed bias.
    w_cat = [
        jnp.concatenate(
            [_pad2d(jnp.transpose(params["w_ih"][l]), hidden_p, hidden_p),
             _pad2d(jnp.transpose(params["w_hh"][l]), hidden_p, hidden_p)],
            axis=0)
        for l in range(1, n_layers)
    ]
    b_cat = [
        _pad2d((params["b_ih"][l] + params["b_hh"][l]).reshape(1, hidden_dim),
               1, hidden_p)
        for l in range(1, n_layers)
    ]
    w_fc = _pad2d(jnp.transpose(params["w_fc"]), hidden_p, output_size)
    b_fc = params["b_fc"].reshape(1, output_size)

    kernel = make_rnn_kernel(n_layers, seq_len, batch_p)
    inputs = (x2d, w_in0, b0, w_hh0, *w_cat, *b_cat, w_fc, b_fc)
    vmem_spec = pl.BlockSpec(memory_space=pltpu.MemorySpace.VMEM)

    out2d, hidden = pl.pallas_call(
        kernel,
        out_shape=(
            jax.ShapeDtypeStruct((seq_len * batch_p, output_size), jnp.float32),
            jax.ShapeDtypeStruct((n_layers, batch_p, hidden_p), jnp.float32),
        ),
        in_specs=[vmem_spec] * len(inputs),
        out_specs=(vmem_spec, vmem_spec),
        scratch_shapes=[
            pltpu.VMEM((seq_len * batch_p, hidden_p), jnp.float32),   # x projection
            pltpu.VMEM((n_layers, batch_p, hidden_p), jnp.float32),   # hidden state
            pltpu.VMEM((seq_len * batch_p, hidden_p), jnp.float32),   # last-layer seq
        ],
    )(*inputs)

    # Un-pad. PyTorch: out.view(-1, hidden) -> fc -> sigmoid, seq-major flattening.
    out = out2d.reshape(seq_len, batch_p, output_size)[:, :batch]
    out = out.reshape(seq_len * batch, output_size)
    hidden = hidden[:, :batch, :hidden_dim]
    return out, hidden


def init_params(key, input_size, output_size, hidden_dim, n_layers):
    """Deterministic init mirroring PyTorch's U(-1/sqrt(hidden), 1/sqrt(hidden))."""
    bound = 1.0 / jnp.sqrt(hidden_dim)
    keys = jax.random.split(key, 4 * n_layers + 2)
    w_ih, w_hh, b_ih, b_hh = [], [], [], []
    k_idx = 0
    for l in range(n_layers):
        in_dim = input_size if l == 0 else hidden_dim
        w_ih.append(jax.random.uniform(keys[k_idx], (hidden_dim, in_dim),
                                       minval=-bound, maxval=bound)); k_idx += 1
        w_hh.append(jax.random.uniform(keys[k_idx], (hidden_dim, hidden_dim),
                                       minval=-bound, maxval=bound)); k_idx += 1
        b_ih.append(jax.random.uniform(keys[k_idx], (hidden_dim,),
                                       minval=-bound, maxval=bound)); k_idx += 1
        b_hh.append(jax.random.uniform(keys[k_idx], (hidden_dim,),
                                       minval=-bound, maxval=bound)); k_idx += 1
    w_fc = jax.random.uniform(keys[k_idx], (output_size, hidden_dim),
                              minval=-bound, maxval=bound); k_idx += 1
    b_fc = jax.random.uniform(keys[k_idx], (output_size,),
                              minval=-bound, maxval=bound)
    return {
        "w_ih": w_ih, "w_hh": w_hh,
        "b_ih": jnp.stack(b_ih), "b_hh": jnp.stack(b_hh),
        "w_fc": w_fc, "b_fc": b_fc,
    }


def reference_forward(x, params, *, n_layers, hidden_dim, output_size):
    """Pure-JAX reference (mirrors PyTorch nn.RNN / Linear / Sigmoid semantics)."""
    seq_len, batch, _ = x.shape
    h = jnp.zeros((n_layers, batch, hidden_dim), jnp.float32)
    outs = []
    for t in range(seq_len):
        inp = x[t]
        new_h = []
        for l in range(n_layers):
            hl = jnp.tanh(
                inp @ params["w_ih"][l].T + params["b_ih"][l]
                + h[l] @ params["w_hh"][l].T + params["b_hh"][l]
            )
            new_h.append(hl)
            inp = hl
        h = jnp.stack(new_h)
        outs.append(inp)
    out = jnp.stack(outs).reshape(-1, hidden_dim)
    out = out @ params["w_fc"].T + params["b_fc"]
    out = jax.nn.sigmoid(out)
    return out, h


if __name__ == "__main__":
    input_size = 4
    output_size = 1
    hidden_dim = 32
    n_layers = 2
    seq_len = 8
    batch = 2

    key = jax.random.PRNGKey(0)
    k_x, k_p = jax.random.split(key)
    x = jax.random.normal(k_x, (seq_len, batch, input_size), dtype=jnp.float32)
    params = init_params(k_p, input_size, output_size, hidden_dim, n_layers)

    fwd = functools.partial(basic_rnn_forward, n_layers=n_layers,
                            hidden_dim=hidden_dim, output_size=output_size)
    out, hidden = jax.jit(fwd)(x, params)
    out = jax.block_until_ready(out)
    hidden = jax.block_until_ready(hidden)

    out_ref, hidden_ref = reference_forward(
        x, params, n_layers=n_layers, hidden_dim=hidden_dim,
        output_size=output_size)

    assert out.shape == (seq_len * batch, output_size)
    assert hidden.shape == (n_layers, batch, hidden_dim)
    assert jnp.allclose(out, out_ref, atol=1e-5, rtol=1e-5)
    assert jnp.allclose(hidden, hidden_ref, atol=1e-5, rtol=1e-5)

    print("KERNEL_OK")
</pallas_src>

<mosaic_0001>
module attributes {stable_mosaic.version = 11 : i64} {
  func.func @kernel(%arg0: memref<64x4xf32, #tpu.memory_space<vmem>>, %arg1: memref<4x128xf32, #tpu.memory_space<vmem>>, %arg2: memref<1x128xf32, #tpu.memory_space<vmem>>, %arg3: memref<128x128xf32, #tpu.memory_space<vmem>>, %arg4: memref<256x128xf32, #tpu.memory_space<vmem>>, %arg5: memref<1x128xf32, #tpu.memory_space<vmem>>, %arg6: memref<128x1xf32, #tpu.memory_space<vmem>>, %arg7: memref<1x1xf32, #tpu.memory_space<vmem>>, %arg8: memref<64x1xf32, #tpu.memory_space<vmem>>, %arg9: memref<2x8x128xf32, #tpu.memory_space<vmem>>, %arg10: memref<64x128xf32, #tpu.memory_space<vmem>>, %arg11: memref<2x8x128xf32, #tpu.memory_space<vmem>>, %arg12: memref<64x128xf32, #tpu.memory_space<vmem>>) attributes {dimension_semantics = [], scalar_prefetch = 0 : i64, scratch_operands = 3 : i64, tpu.core_type = #tpu.core_type<tc>} {
    %c0 = arith.constant 0 : index
    %c0_0 = arith.constant 0 : index
    %0 = vector.load %arg3[%c0, %c0_0] : memref<128x128xf32, #tpu.memory_space<vmem>>, vector<128x128xf32>
    %c0_1 = arith.constant 0 : index
    %c0_2 = arith.constant 0 : index
    %1 = vector.load %arg4[%c0_1, %c0_2] : memref<256x128xf32, #tpu.memory_space<vmem>>, vector<256x128xf32>
    %c0_3 = arith.constant 0 : index
    %c0_4 = arith.constant 0 : index
    %2 = vector.load %arg5[%c0_3, %c0_4] : memref<1x128xf32, #tpu.memory_space<vmem>>, vector<1x128xf32>
    %cst = arith.constant 0.000000e+00 : f32
    %3 = vector.broadcast %cst : f32 to vector<2x8x128xf32>
    %c0_5 = arith.constant 0 : index
    %c0_6 = arith.constant 0 : index
    %c0_7 = arith.constant 0 : index
    %4 = vector.load %arg11[%c0_5, %c0_6, %c0_7] : memref<2x8x128xf32, #tpu.memory_space<vmem>>, vector<2x8x128xf32>
    tpu.vector_store %arg11[%c0_5, %c0_6, %c0_7], %3 {strides = array<i32>} : memref<2x8x128xf32, #tpu.memory_space<vmem>>, vector<2x8x128xf32>,
    %c0_8 = arith.constant 0 : index
    %c0_9 = arith.constant 0 : index
    %5 = vector.load %arg0[%c0_8, %c0_9] : memref<64x4xf32, #tpu.memory_space<vmem>>, vector<64x4xf32>
    %c0_10 = arith.constant 0 : index
    %c0_11 = arith.constant 0 : index
    %6 = vector.load %arg1[%c0_10, %c0_11] : memref<4x128xf32, #tpu.memory_space<vmem>>, vector<4x128xf32>
    %cst_12 = arith.constant dense<0.000000e+00> : vector<64x128xf32>
    %7 = tpu.matmul %5, %6, %cst_12 {dimension_numbers = #tpu.dot_dimension_numbers<[1], [0], [0], [1], [0, 0, 1, 1], [], []>} : vector<64x4xf32>, vector<4x128xf32>, vector<64x128xf32> -> vector<64x128xf32>
    %c0_13 = arith.constant 0 : index
    %c0_14 = arith.constant 0 : index
    %8 = vector.load %arg2[%c0_13, %c0_14] : memref<1x128xf32, #tpu.memory_space<vmem>>, vector<1x128xf32>
    %9 = vector.broadcast %8 : vector<1x128xf32> to vector<64x128xf32>
    %10 = arith.addf %7, %9 : vector<64x128xf32>
    %c0_15 = arith.constant 0 : index
    %c0_16 = arith.constant 0 : index
    %11 = vector.load %arg10[%c0_15, %c0_16] : memref<64x128xf32, #tpu.memory_space<vmem>>, vector<64x128xf32>
    tpu.vector_store %arg10[%c0_15, %c0_16], %10 {strides = array<i32>} : memref<64x128xf32, #tpu.memory_space<vmem>>, vector<64x128xf32>,
    %c0_i32 = arith.constant 0 : i32
    %c8_i32 = arith.constant 8 : i32
    %12 = arith.muli %c0_i32, %c8_i32 : i32
    %13 = tpu.assume_multiple %12, 8 : i32
    %14 = arith.index_cast %13 : i32 to index
    %c0_17 = arith.constant 0 : index
    %15 = vector.load %arg10[%14, %c0_17] : memref<64x128xf32, #tpu.memory_space<vmem>>, vector<8x128xf32>
    %c0_18 = arith.constant 0 : index
    %c0_19 = arith.constant 0 : index
    %c0_20 = arith.constant 0 : index
    %16 = vector.load %arg11[%c0_18, %c0_19, %c0_20] : memref<2x8x128xf32, #tpu.memory_space<vmem>>, vector<1x8x128xf32>
    %17 = vector.shape_cast %16 : vector<1x8x128xf32> to vector<8x128xf32>
    %cst_21 = arith.constant dense<0.000000e+00> : vector<8x128xf32>
    %18 = tpu.matmul %17, %0, %cst_21 {dimension_numbers = #tpu.dot_dimension_numbers<[1], [0], [0], [1], [0, 0, 1, 1], [], []>} : vector<8x128xf32>, vector<128x128xf32>, vector<8x128xf32> -> vector<8x128xf32>
    %19 = arith.addf %15, %18 : vector<8x128xf32>
    %20 = math.tanh %19 : vector<8x128xf32>
    %c0_22 = arith.constant 0 : index
    %c0_23 = arith.constant 0 : index
    %c0_24 = arith.constant 0 : index
    %21 = vector.load %arg11[%c0_22, %c0_23, %c0_24] : memref<2x8x128xf32, #tpu.memory_space<vmem>>, vector<1x8x128xf32>
    %22 = vector.shape_cast %21 : vector<1x8x128xf32> to vector<8x128xf32>
    %23 = vector.shape_cast %20 : vector<8x128xf32> to vector<1x8x128xf32>
    tpu.vector_store %arg11[%c0_22, %c0_23, %c0_24], %23 {strides = array<i32>} : memref<2x8x128xf32, #tpu.memory_space<vmem>>, vector<1x8x128xf32>,
    %c1 = arith.constant 1 : index
    %c0_25 = arith.constant 0 : index
    %c0_26 = arith.constant 0 : index
    %24 = vector.load %arg11[%c1, %c0_25, %c0_26] : memref<2x8x128xf32, #tpu.memory_space<vmem>>, vector<1x8x128xf32>
    %25 = vector.shape_cast %24 : vector<1x8x128xf32> to vector<8x128xf32>
    %26 = tpu.concatenate %20, %25 in 1 : vector<8x128xf32>, vector<8x128xf32> -> vector<8x256xf32>
    %cst_27 = arith.constant dense<0.000000e+00> : vector<8x128xf32>
    %27 = tpu.matmul %26, %1, %cst_27 {dimension_numbers = #tpu.dot_dimension_numbers<[1], [0], [0], [1], [0, 0, 1, 1], [], []>} : vector<8x256xf32>, vector<256x128xf32>, vector<8x128xf32> -> vector<8x128xf32>
    %28 = vector.broadcast %2 : vector<1x128xf32> to vector<8x128xf32>
    %29 = arith.addf %27, %28 : vector<8x128xf32>
    %30 = math.tanh %29 : vector<8x128xf32>
    %c1_28 = arith.constant 1 : index
    %c0_29 = arith.constant 0 : index
    %c0_30 = arith.constant 0 : index
    %31 = vector.load %arg11[%c1_28, %c0_29, %c0_30] : memref<2x8x128xf32, #tpu.memory_space<vmem>>, vector<1x8x128xf32>
    %32 = vector.shape_cast %31 : vector<1x8x128xf32> to vector<8x128xf32>
    %33 = vector.shape_cast %30 : vector<8x128xf32> to vector<1x8x128xf32>
    tpu.vector_store %arg11[%c1_28, %c0_29, %c0_30], %33 {strides = array<i32>} : memref<2x8x128xf32, #tpu.memory_space<vmem>>, vector<1x8x128xf32>,
    %34 = arith.index_cast %13 : i32 to index
    %c0_31 = arith.constant 0 : index
    %35 = vector.load %arg12[%34, %c0_31] : memref<64x128xf32, #tpu.memory_space<vmem>>, vector<8x128xf32>
    tpu.vector_store %arg12[%34, %c0_31], %30 {strides = array<i32>} : memref<64x128xf32, #tpu.memory_space<vmem>>, vector<8x128xf32>,
    %c1_i32 = arith.constant 1 : i32
    %c8_i32_32 = arith.constant 8 : i32
    %36 = arith.muli %c1_i32, %c8_i32_32 : i32
    %37 = tpu.assume_multiple %36, 8 : i32
    %38 = arith.index_cast %37 : i32 to index
    %c0_33 = arith.constant 0 : index
    %39 = vector.load %arg10[%38, %c0_33] : memref<64x128xf32, #tpu.memory_space<vmem>>, vector<8x128xf32>
    %c0_34 = arith.constant 0 : index
    %c0_35 = arith.constant 0 : index
    %c0_36 = arith.constant 0 : index
    %40 = vector.load %arg11[%c0_34, %c0_35, %c0_36] : memref<2x8x128xf32, #tpu.memory_space<vmem>>, vector<1x8x128xf32>
    %41 = vector.shape_cast %40 : vector<1x8x128xf32> to vector<8x128xf32>
    %cst_37 = arith.constant dense<0.000000e+00> : vector<8x128xf32>
    %42 = tpu.matmul %41, %0, %cst_37 {dimension_numbers = #tpu.dot_dimension_numbers<[1], [0], [0], [1], [0, 0, 1, 1], [], []>} : vector<8x128xf32>, vector<128x128xf32>, vector<8x128xf32> -> vector<8x128xf32>
    %43 = arith.addf %39, %42 : vector<8x128xf32>
    %44 = math.tanh %43 : vector<8x128xf32>
    %c0_38 = arith.constant 0 : index
    %c0_39 = arith.constant 0 : index
    %c0_40 = arith.constant 0 : index
    %45 = vector.load %arg11[%c0_38, %c0_39, %c0_40] : memref<2x8x128xf32, #tpu.memory_space<vmem>>, vector<1x8x128xf32>
    %46 = vector.shape_cast %45 : vector<1x8x128xf32> to vector<8x128xf32>
    %47 = vector.shape_cast %44 : vector<8x128xf32> to vector<1x8x128xf32>
    tpu.vector_store %arg11[%c0_38, %c0_39, %c0_40], %47 {strides = array<i32>} : memref<2x8x128xf32, #tpu.memory_space<vmem>>, vector<1x8x128xf32>,
    %c1_41 = arith.constant 1 : index
    %c0_42 = arith.constant 0 : index
    %c0_43 = arith.constant 0 : index
    %48 = vector.load %arg11[%c1_41, %c0_42, %c0_43] : memref<2x8x128xf32, #tpu.memory_space<vmem>>, vector<1x8x128xf32>
    %49 = vector.shape_cast %48 : vector<1x8x128xf32> to vector<8x128xf32>
    %50 = tpu.concatenate %44, %49 in 1 : vector<8x128xf32>, vector<8x128xf32> -> vector<8x256xf32>
    %cst_44 = arith.constant dense<0.000000e+00> : vector<8x128xf32>
    %51 = tpu.matmul %50, %1, %cst_44 {dimension_numbers = #tpu.dot_dimension_numbers<[1], [0], [0], [1], [0, 0, 1, 1], [], []>} : vector<8x256xf32>, vector<256x128xf32>, vector<8x128xf32> -> vector<8x128xf32>
    %52 = vector.broadcast %2 : vector<1x128xf32> to vector<8x128xf32>
    %53 = arith.addf %51, %52 : vector<8x128xf32>
    %54 = math.tanh %53 : vector<8x128xf32>
    %c1_45 = arith.constant 1 : index
    %c0_46 = arith.constant 0 : index
    %c0_47 = arith.constant 0 : index
    %55 = vector.load %arg11[%c1_45, %c0_46, %c0_47] : memref<2x8x128xf32, #tpu.memory_space<vmem>>, vector<1x8x128xf32>
    %56 = vector.shape_cast %55 : vector<1x8x128xf32> to vector<8x128xf32>
    %57 = vector.shape_cast %54 : vector<8x128xf32> to vector<1x8x128xf32>
    tpu.vector_store %arg11[%c1_45, %c0_46, %c0_47], %57 {strides = array<i32>} : memref<2x8x128xf32, #tpu.memory_space<vmem>>, vector<1x8x128xf32>,
    %58 = arith.index_cast %37 : i32 to index
    %c0_48 = arith.constant 0 : index
    %59 = vector.load %arg12[%58, %c0_48] : memref<64x128xf32, #tpu.memory_space<vmem>>, vector<8x128xf32>
    tpu.vector_store %arg12[%58, %c0_48], %54 {strides = array<i32>} : memref<64x128xf32, #tpu.memory_space<vmem>>, vector<8x128xf32>,
    %c2_i32 = arith.constant 2 : i32
    %c8_i32_49 = arith.constant 8 : i32
    %60 = arith.muli %c2_i32, %c8_i32_49 : i32
    %61 = tpu.assume_multiple %60, 8 : i32
    %62 = arith.index_cast %61 : i32 to index
    %c0_50 = arith.constant 0 : index
    %63 = vector.load %arg10[%62, %c0_50] : memref<64x128xf32, #tpu.memory_space<vmem>>, vector<8x128xf32>
    %c0_51 = arith.constant 0 : index
    %c0_52 = arith.constant 0 : index
    %c0_53 = arith.constant 0 : index
    %64 = vector.load %arg11[%c0_51, %c0_52, %c0_53] : memref<2x8x128xf32, #tpu.memory_space<vmem>>, vector<1x8x128xf32>
    %65 = vector.shape_cast %64 : vector<1x8x128xf32> to vector<8x128xf32>
    %cst_54 = arith.constant dense<0.000000e+00> : vector<8x128xf32>
    %66 = tpu.matmul %65, %0, %cst_54 {dimension_numbers = #tpu.dot_dimension_numbers<[1], [0], [0], [1], [0, 0, 1, 1], [], []>} : vector<8x128xf32>, vector<128x128xf32>, vector<8x128xf32> -> vector<8x128xf32>
    %67 = arith.addf %63, %66 : vector<8x128xf32>
    %68 = math.tanh %67 : vector<8x128xf32>
    %c0_55 = arith.constant 0 : index
    %c0_56 = arith.constant 0 : index
    %c0_57 = arith.constant 0 : index
    %69 = vector.load %arg11[%c0_55, %c0_56, %c0_57] : memref<2x8x128xf32, #tpu.memory_space<vmem>>, vector<1x8x128xf32>
    %70 = vector.shape_cast %69 : vector<1x8x128xf32> to vector<8x128xf32>
    %71 = vector.shape_cast %68 : vector<8x128xf32> to vector<1x8x128xf32>
    tpu.vector_store %arg11[%c0_55, %c0_56, %c0_57], %71 {strides = array<i32>} : memref<2x8x128xf32, #tpu.memory_space<vmem>>, vector<1x8x128xf32>,
    %c1_58 = arith.constant 1 : index
    %c0_59 = arith.constant 0 : index
    %c0_60 = arith.constant 0 : index
    %72 = vector.load %arg11[%c1_58, %c0_59, %c0_60] : memref<2x8x128xf32, #tpu.memory_space<vmem>>, vector<1x8x128xf32>
    %73 = vector.shape_cast %72 : vector<1x8x128xf32> to vector<8x128xf32>
    %74 = tpu.concatenate %68, %73 in 1 : vector<8x128xf32>, vector<8x128xf32> -> vector<8x256xf32>
    %cst_61 = arith.constant dense<0.000000e+00> : vector<8x128xf32>
    %75 = tpu.matmul %74, %1, %cst_61 {dimension_numbers = #tpu.dot_dimension_numbers<[1], [0], [0], [1], [0, 0, 1, 1], [], []>} : vector<8x256xf32>, vector<256x128xf32>, vector<8x128xf32> -> vector<8x128xf32>
    %76 = vector.broadcast %2 : vector<1x128xf32> to vector<8x128xf32>
    %77 = arith.addf %75, %76 : vector<8x128xf32>
    %78 = math.tanh %77 : vector<8x128xf32>
    %c1_62 = arith.constant 1 : index
    %c0_63 = arith.constant 0 : index
    %c0_64 = arith.constant 0 : index
    %79 = vector.load %arg11[%c1_62, %c0_63, %c0_64] : memref<2x8x128xf32, #tpu.memory_space<vmem>>, vector<1x8x128xf32>
    %80 = vector.shape_cast %79 : vector<1x8x128xf32> to vector<8x128xf32>
    %81 = vector.shape_cast %78 : vector<8x128xf32> to vector<1x8x128xf32>
    tpu.vector_store %arg11[%c1_62, %c0_63, %c0_64], %81 {strides = array<i32>} : memref<2x8x128xf32, #tpu.memory_space<vmem>>, vector<1x8x128xf32>,
    %82 = arith.index_cast %61 : i32 to index
    %c0_65 = arith.constant 0 : index
    %83 = vector.load %arg12[%82, %c0_65] : memref<64x128xf32, #tpu.memory_space<vmem>>, vector<8x128xf32>
    tpu.vector_store %arg12[%82, %c0_65], %78 {strides = array<i32>} : memref<64x128xf32, #tpu.memory_space<vmem>>, vector<8x128xf32>,
    %c3_i32 = arith.constant 3 : i32
    %c8_i32_66 = arith.constant 8 : i32
    %84 = arith.muli %c3_i32, %c8_i32_66 : i32
    %85 = tpu.assume_multiple %84, 8 : i32
    %86 = arith.index_cast %85 : i32 to index
    %c0_67 = arith.constant 0 : index
    %87 = vector.load %arg10[%86, %c0_67] : memref<64x128xf32, #tpu.memory_space<vmem>>, vector<8x128xf32>
    %c0_68 = arith.constant 0 : index
    %c0_69 = arith.constant 0 : index
    %c0_70 = arith.constant 0 : index
    %88 = vector.load %arg11[%c0_68, %c0_69, %c0_70] : memref<2x8x128xf32, #tpu.memory_space<vmem>>, vector<1x8x128xf32>
    %89 = vector.shape_cast %88 : vector<1x8x128xf32> to vector<8x128xf32>
    %cst_71 = arith.constant dense<0.000000e+00> : vector<8x128xf32>
    %90 = tpu.matmul %89, %0, %cst_71 {dimension_numbers = #tpu.dot_dimension_numbers<[1], [0], [0], [1], [0, 0, 1, 1], [], []>} : vector<8x128xf32>, vector<128x128xf32>, vector<8x128xf32> -> vector<8x128xf32>
    %91 = arith.addf %87, %90 : vector<8x128xf32>
    %92 = math.tanh %91 : vector<8x128xf32>
    %c0_72 = arith.constant 0 : index
    %c0_73 = arith.constant 0 : index
    %c0_74 = arith.constant 0 : index
    %93 = vector.load %arg11[%c0_72, %c0_73, %c0_74] : memref<2x8x128xf32, #tpu.memory_space<vmem>>, vector<1x8x128xf32>
    %94 = vector.shape_cast %93 : vector<1x8x128xf32> to vector<8x128xf32>
    %95 = vector.shape_cast %92 : vector<8x128xf32> to vector<1x8x128xf32>
    tpu.vector_store %arg11[%c0_72, %c0_73, %c0_74], %95 {strides = array<i32>} : memref<2x8x128xf32, #tpu.memory_space<vmem>>, vector<1x8x128xf32>,
    %c1_75 = arith.constant 1 : index
    %c0_76 = arith.constant 0 : index
    %c0_77 = arith.constant 0 : index
    %96 = vector.load %arg11[%c1_75, %c0_76, %c0_77] : memref<2x8x128xf32, #tpu.memory_space<vmem>>, vector<1x8x128xf32>
    %97 = vector.shape_cast %96 : vector<1x8x128xf32> to vector<8x128xf32>
    %98 = tpu.concatenate %92, %97 in 1 : vector<8x128xf32>, vector<8x128xf32> -> vector<8x256xf32>
    %cst_78 = arith.constant dense<0.000000e+00> : vector<8x128xf32>
    %99 = tpu.matmul %98, %1, %cst_78 {dimension_numbers = #tpu.dot_dimension_numbers<[1], [0], [0], [1], [0, 0, 1, 1], [], []>} : vector<8x256xf32>, vector<256x128xf32>, vector<8x128xf32> -> vector<8x128xf32>
    %100 = vector.broadcast %2 : vector<1x128xf32> to vector<8x128xf32>
    %101 = arith.addf %99, %100 : vector<8x128xf32>
    %102 = math.tanh %101 : vector<8x128xf32>
    %c1_79 = arith.constant 1 : index
    %c0_80 = arith.constant 0 : index
    %c0_81 = arith.constant 0 : index
    %103 = vector.load %arg11[%c1_79, %c0_80, %c0_81] : memref<2x8x128xf32, #tpu.memory_space<vmem>>, vector<1x8x128xf32>
    %104 = vector.shape_cast %103 : vector<1x8x128xf32> to vector<8x128xf32>
    %105 = vector.shape_cast %102 : vector<8x128xf32> to vector<1x8x128xf32>
    tpu.vector_store %arg11[%c1_79, %c0_80, %c0_81], %105 {strides = array<i32>} : memref<2x8x128xf32, #tpu.memory_space<vmem>>, vector<1x8x128xf32>,
    %106 = arith.index_cast %85 : i32 to index
    %c0_82 = arith.constant 0 : index
    %107 = vector.load %arg12[%106, %c0_82] : memref<64x128xf32, #tpu.memory_space<vmem>>, vector<8x128xf32>
    tpu.vector_store %arg12[%106, %c0_82], %102 {strides = array<i32>} : memref<64x128xf32, #tpu.memory_space<vmem>>, vector<8x128xf32>,
    %c4_i32 = arith.constant 4 : i32
    %c8_i32_83 = arith.constant 8 : i32
    %108 = arith.muli %c4_i32, %c8_i32_83 : i32
    %109 = tpu.assume_multiple %108, 8 : i32
    %110 = arith.index_cast %109 : i32 to index
    %c0_84 = arith.constant 0 : index
    %111 = vector.load %arg10[%110, %c0_84] : memref<64x128xf32, #tpu.memory_space<vmem>>, vector<8x128xf32>
    %c0_85 = arith.constant 0 : index
    %c0_86 = arith.constant 0 : index
    %c0_87 = arith.constant 0 : index
    %112 = vector.load %arg11[%c0_85, %c0_86, %c0_87] : memref<2x8x128xf32, #tpu.memory_space<vmem>>, vector<1x8x128xf32>
    %113 = vector.shape_cast %112 : vector<1x8x128xf32> to vector<8x128xf32>
    %cst_88 = arith.constant dense<0.000000e+00> : vector<8x128xf32>
    %114 = tpu.matmul %113, %0, %cst_88 {dimension_numbers = #tpu.dot_dimension_numbers<[1], [0], [0], [1], [0, 0, 1, 1], [], []>} : vector<8x128xf32>, vector<128x128xf32>, vector<8x128xf32> -> vector<8x128xf32>
    %115 = arith.addf %111, %114 : vector<8x128xf32>
    %116 = math.tanh %115 : vector<8x128xf32>
    %c0_89 = arith.constant 0 : index
    %c0_90 = arith.constant 0 : index
    %c0_91 = arith.constant 0 : index
    %117 = vector.load %arg11[%c0_89, %c0_90, %c0_91] : memref<2x8x128xf32, #tpu.memory_space<vmem>>, vector<1x8x128xf32>
    %118 = vector.shape_cast %117 : vector<1x8x128xf32> to vector<8x128xf32>
    %119 = vector.shape_cast %116 : vector<8x128xf32> to vector<1x8x128xf32>
    tpu.vector_store %arg11[%c0_89, %c0_90, %c0_91], %119 {strides = array<i32>} : memref<2x8x128xf32, #tpu.memory_space<vmem>>, vector<1x8x128xf32>,
    %c1_92 = arith.constant 1 : index
    %c0_93 = arith.constant 0 : index
    %c0_94 = arith.constant 0 : index
    %120 = vector.load %arg11[%c1_92, %c0_93, %c0_94] : memref<2x8x128xf32, #tpu.memory_space<vmem>>, vector<1x8x128xf32>
    %121 = vector.shape_cast %120 : vector<1x8x128xf32> to vector<8x128xf32>
    %122 = tpu.concatenate %116, %121 in 1 : vector<8x128xf32>, vector<8x128xf32> -> vector<8x256xf32>
    %cst_95 = arith.constant dense<0.000000e+00> : vector<8x128xf32>
    %123 = tpu.matmul %122, %1, %cst_95 {dimension_numbers = #tpu.dot_dimension_numbers<[1], [0], [0], [1], [0, 0, 1, 1], [], []>} : vector<8x256xf32>, vector<256x128xf32>, vector<8x128xf32> -> vector<8x128xf32>
    %124 = vector.broadcast %2 : vector<1x128xf32> to vector<8x128xf32>
    %125 = arith.addf %123, %124 : vector<8x128xf32>
    %126 = math.tanh %125 : vector<8x128xf32>
    %c1_96 = arith.constant 1 : index
    %c0_97 = arith.constant 0 : index
    %c0_98 = arith.constant 0 : index
    %127 = vector.load %arg11[%c1_96, %c0_97, %c0_98] : memref<2x8x128xf32, #tpu.memory_space<vmem>>, vector<1x8x128xf32>
    %128 = vector.shape_cast %127 : vector<1x8x128xf32> to vector<8x128xf32>
    %129 = vector.shape_cast %126 : vector<8x128xf32> to vector<1x8x128xf32>
    tpu.vector_store %arg11[%c1_96, %c0_97, %c0_98], %129 {strides = array<i32>} : memref<2x8x128xf32, #tpu.memory_space<vmem>>, vector<1x8x128xf32>,
    %130 = arith.index_cast %109 : i32 to index
    %c0_99 = arith.constant 0 : index
    %131 = vector.load %arg12[%130, %c0_99] : memref<64x128xf32, #tpu.memory_space<vmem>>, vector<8x128xf32>
    tpu.vector_store %arg12[%130, %c0_99], %126 {strides = array<i32>} : memref<64x128xf32, #tpu.memory_space<vmem>>, vector<8x128xf32>,
    %c5_i32 = arith.constant 5 : i32
    %c8_i32_100 = arith.constant 8 : i32
    %132 = arith.muli %c5_i32, %c8_i32_100 : i32
    %133 = tpu.assume_multiple %132, 8 : i32
    %134 = arith.index_cast %133 : i32 to index
    %c0_101 = arith.constant 0 : index
    %135 = vector.load %arg10[%134, %c0_101] : memref<64x128xf32, #tpu.memory_space<vmem>>, vector<8x128xf32>
    %c0_102 = arith.constant 0 : index
    %c0_103 = arith.constant 0 : index
    %c0_104 = arith.constant 0 : index
    %136 = vector.load %arg11[%c0_102, %c0_103, %c0_104] : memref<2x8x128xf32, #tpu.memory_space<vmem>>, vector<1x8x128xf32>
    %137 = vector.shape_cast %136 : vector<1x8x128xf32> to vector<8x128xf32>
    %cst_105 = arith.constant dense<0.000000e+00> : vector<8x128xf32>
    %138 = tpu.matmul %137, %0, %cst_105 {dimension_numbers = #tpu.dot_dimension_numbers<[1], [0], [0], [1], [0, 0, 1, 1], [], []>} : vector<8x128xf32>, vector<128x128xf32>, vector<8x128xf32> -> vector<8x128xf32>
    %139 = arith.addf %135, %138 : vector<8x128xf32>
    %140 = math.tanh %139 : vector<8x128xf32>
    %c0_106 = arith.constant 0 : index
    %c0_107 = arith.constant 0 : index
    %c0_108 = arith.constant 0 : index
    %141 = vector.load %arg11[%c0_106, %c0_107, %c0_108] : memref<2x8x128xf32, #tpu.memory_space<vmem>>, vector<1x8x128xf32>
    %142 = vector.shape_cast %141 : vector<1x8x128xf32> to vector<8x128xf32>
    %143 = vector.shape_cast %140 : vector<8x128xf32> to vector<1x8x128xf32>
    tpu.vector_store %arg11[%c0_106, %c0_107, %c0_108], %143 {strides = array<i32>} : memref<2x8x128xf32, #tpu.memory_space<vmem>>, vector<1x8x128xf32>,
    %c1_109 = arith.constant 1 : index
    %c0_110 = arith.constant 0 : index
    %c0_111 = arith.constant 0 : index
    %144 = vector.load %arg11[%c1_109, %c0_110, %c0_111] : memref<2x8x128xf32, #tpu.memory_space<vmem>>, vector<1x8x128xf32>
    %145 = vector.shape_cast %144 : vector<1x8x128xf32> to vector<8x128xf32>
    %146 = tpu.concatenate %140, %145 in 1 : vector<8x128xf32>, vector<8x128xf32> -> vector<8x256xf32>
    %cst_112 = arith.constant dense<0.000000e+00> : vector<8x128xf32>
    %147 = tpu.matmul %146, %1, %cst_112 {dimension_numbers = #tpu.dot_dimension_numbers<[1], [0], [0], [1], [0, 0, 1, 1], [], []>} : vector<8x256xf32>, vector<256x128xf32>, vector<8x128xf32> -> vector<8x128xf32>
    %148 = vector.broadcast %2 : vector<1x128xf32> to vector<8x128xf32>
    %149 = arith.addf %147, %148 : vector<8x128xf32>
    %150 = math.tanh %149 : vector<8x128xf32>
    %c1_113 = arith.constant 1 : index
    %c0_114 = arith.constant 0 : index
    %c0_115 = arith.constant 0 : index
    %151 = vector.load %arg11[%c1_113, %c0_114, %c0_115] : memref<2x8x128xf32, #tpu.memory_space<vmem>>, vector<1x8x128xf32>
    %152 = vector.shape_cast %151 : vector<1x8x128xf32> to vector<8x128xf32>
    %153 = vector.shape_cast %150 : vector<8x128xf32> to vector<1x8x128xf32>
    tpu.vector_store %arg11[%c1_113, %c0_114, %c0_115], %153 {strides = array<i32>} : memref<2x8x128xf32, #tpu.memory_space<vmem>>, vector<1x8x128xf32>,
    %154 = arith.index_cast %133 : i32 to index
    %c0_116 = arith.constant 0 : index
    %155 = vector.load %arg12[%154, %c0_116] : memref<64x128xf32, #tpu.memory_space<vmem>>, vector<8x128xf32>
    tpu.vector_store %arg12[%154, %c0_116], %150 {strides = array<i32>} : memref<64x128xf32, #tpu.memory_space<vmem>>, vector<8x128xf32>,
    %c6_i32 = arith.constant 6 : i32
    %c8_i32_117 = arith.constant 8 : i32
    %156 = arith.muli %c6_i32, %c8_i32_117 : i32
    %157 = tpu.assume_multiple %156, 8 : i32
    %158 = arith.index_cast %157 : i32 to index
    %c0_118 = arith.constant 0 : index
    %159 = vector.load %arg10[%158, %c0_118] : memref<64x128xf32, #tpu.memory_space<vmem>>, vector<8x128xf32>
    %c0_119 = arith.constant 0 : index
    %c0_120 = arith.constant 0 : index
    %c0_121 = arith.constant 0 : index
    %160 = vector.load %arg11[%c0_119, %c0_120, %c0_121] : memref<2x8x128xf32, #tpu.memory_space<vmem>>, vector<1x8x128xf32>
    %161 = vector.shape_cast %160 : vector<1x8x128xf32> to vector<8x128xf32>
    %cst_122 = arith.constant dense<0.000000e+00> : vector<8x128xf32>
    %162 = tpu.matmul %161, %0, %cst_122 {dimension_numbers = #tpu.dot_dimension_numbers<[1], [0], [0], [1], [0, 0, 1, 1], [], []>} : vector<8x128xf32>, vector<128x128xf32>, vector<8x128xf32> -> vector<8x128xf32>
    %163 = arith.addf %159, %162 : vector<8x128xf32>
    %164 = math.tanh %163 : vector<8x128xf32>
    %c0_123 = arith.constant 0 : index
    %c0_124 = arith.constant 0 : index
    %c0_125 = arith.constant 0 : index
    %165 = vector.load %arg11[%c0_123, %c0_124, %c0_125] : memref<2x8x128xf32, #tpu.memory_space<vmem>>, vector<1x8x128xf32>
    %166 = vector.shape_cast %165 : vector<1x8x128xf32> to vector<8x128xf32>
    %167 = vector.shape_cast %164 : vector<8x128xf32> to vector<1x8x128xf32>
    tpu.vector_store %arg11[%c0_123, %c0_124, %c0_125], %167 {strides = array<i32>} : memref<2x8x128xf32, #tpu.memory_space<vmem>>, vector<1x8x128xf32>,
    %c1_126 = arith.constant 1 : index
    %c0_127 = arith.constant 0 : index
    %c0_128 = arith.constant 0 : index
    %168 = vector.load %arg11[%c1_126, %c0_127, %c0_128] : memref<2x8x128xf32, #tpu.memory_space<vmem>>, vector<1x8x128xf32>
    %169 = vector.shape_cast %168 : vector<1x8x128xf32> to vector<8x128xf32>
    %170 = tpu.concatenate %164, %169 in 1 : vector<8x128xf32>, vector<8x128xf32> -> vector<8x256xf32>
    %cst_129 = arith.constant dense<0.000000e+00> : vector<8x128xf32>
    %171 = tpu.matmul %170, %1, %cst_129 {dimension_numbers = #tpu.dot_dimension_numbers<[1], [0], [0], [1], [0, 0, 1, 1], [], []>} : vector<8x256xf32>, vector<256x128xf32>, vector<8x128xf32> -> vector<8x128xf32>
    %172 = vector.broadcast %2 : vector<1x128xf32> to vector<8x128xf32>
    %173 = arith.addf %171, %172 : vector<8x128xf32>
    %174 = math.tanh %173 : vector<8x128xf32>
    %c1_130 = arith.constant 1 : index
    %c0_131 = arith.constant 0 : index
    %c0_132 = arith.constant 0 : index
    %175 = vector.load %arg11[%c1_130, %c0_131, %c0_132] : memref<2x8x128xf32, #tpu.memory_space<vmem>>, vector<1x8x128xf32>
    %176 = vector.shape_cast %175 : vector<1x8x128xf32> to vector<8x128xf32>
    %177 = vector.shape_cast %174 : vector<8x128xf32> to vector<1x8x128xf32>
    tpu.vector_store %arg11[%c1_130, %c0_131, %c0_132], %177 {strides = array<i32>} : memref<2x8x128xf32, #tpu.memory_space<vmem>>, vector<1x8x128xf32>,
    %178 = arith.index_cast %157 : i32 to index
    %c0_133 = arith.constant 0 : index
    %179 = vector.load %arg12[%178, %c0_133] : memref<64x128xf32, #tpu.memory_space<vmem>>, vector<8x128xf32>
    tpu.vector_store %arg12[%178, %c0_133], %174 {strides = array<i32>} : memref<64x128xf32, #tpu.memory_space<vmem>>, vector<8x128xf32>,
    %c7_i32 = arith.constant 7 : i32
    %c8_i32_134 = arith.constant 8 : i32
    %180 = arith.muli %c7_i32, %c8_i32_134 : i32
    %181 = tpu.assume_multiple %180, 8 : i32
    %182 = arith.index_cast %181 : i32 to index
    %c0_135 = arith.constant 0 : index
    %183 = vector.load %arg10[%182, %c0_135] : memref<64x128xf32, #tpu.memory_space<vmem>>, vector<8x128xf32>
    %c0_136 = arith.constant 0 : index
    %c0_137 = arith.constant 0 : index
    %c0_138 = arith.constant 0 : index
    %184 = vector.load %arg11[%c0_136, %c0_137, %c0_138] : memref<2x8x128xf32, #tpu.memory_space<vmem>>, vector<1x8x128xf32>
    %185 = vector.shape_cast %184 : vector<1x8x128xf32> to vector<8x128xf32>
    %cst_139 = arith.constant dense<0.000000e+00> : vector<8x128xf32>
    %186 = tpu.matmul %185, %0, %cst_139 {dimension_numbers = #tpu.dot_dimension_numbers<[1], [0], [0], [1], [0, 0, 1, 1], [], []>} : vector<8x128xf32>, vector<128x128xf32>, vector<8x128xf32> -> vector<8x128xf32>
    %187 = arith.addf %183, %186 : vector<8x128xf32>
    %188 = math.tanh %187 : vector<8x128xf32>
    %c0_140 = arith.constant 0 : index
    %c0_141 = arith.constant 0 : index
    %c0_142 = arith.constant 0 : index
    %189 = vector.load %arg11[%c0_140, %c0_141, %c0_142] : memref<2x8x128xf32, #tpu.memory_space<vmem>>, vector<1x8x128xf32>
    %190 = vector.shape_cast %189 : vector<1x8x128xf32> to vector<8x128xf32>
    %191 = vector.shape_cast %188 : vector<8x128xf32> to vector<1x8x128xf32>
    tpu.vector_store %arg11[%c0_140, %c0_141, %c0_142], %191 {strides = array<i32>} : memref<2x8x128xf32, #tpu.memory_space<vmem>>, vector<1x8x128xf32>,
    %c1_143 = arith.constant 1 : index
    %c0_144 = arith.constant 0 : index
    %c0_145 = arith.constant 0 : index
    %192 = vector.load %arg11[%c1_143, %c0_144, %c0_145] : memref<2x8x128xf32, #tpu.memory_space<vmem>>, vector<1x8x128xf32>
    %193 = vector.shape_cast %192 : vector<1x8x128xf32> to vector<8x128xf32>
    %194 = tpu.concatenate %188, %193 in 1 : vector<8x128xf32>, vector<8x128xf32> -> vector<8x256xf32>
    %cst_146 = arith.constant dense<0.000000e+00> : vector<8x128xf32>
    %195 = tpu.matmul %194, %1, %cst_146 {dimension_numbers = #tpu.dot_dimension_numbers<[1], [0], [0], [1], [0, 0, 1, 1], [], []>} : vector<8x256xf32>, vector<256x128xf32>, vector<8x128xf32> -> vector<8x128xf32>
    %196 = vector.broadcast %2 : vector<1x128xf32> to vector<8x128xf32>
    %197 = arith.addf %195, %196 : vector<8x128xf32>
    %198 = math.tanh %197 : vector<8x128xf32>
    %c1_147 = arith.constant 1 : index
    %c0_148 = arith.constant 0 : index
    %c0_149 = arith.constant 0 : index
    %199 = vector.load %arg11[%c1_147, %c0_148, %c0_149] : memref<2x8x128xf32, #tpu.memory_space<vmem>>, vector<1x8x128xf32>
    %200 = vector.shape_cast %199 : vector<1x8x128xf32> to vector<8x128xf32>
    %201 = vector.shape_cast %198 : vector<8x128xf32> to vector<1x8x128xf32>
    tpu.vector_store %arg11[%c1_147, %c0_148, %c0_149], %201 {strides = array<i32>} : memref<2x8x128xf32, #tpu.memory_space<vmem>>, vector<1x8x128xf32>,
    %202 = arith.index_cast %181 : i32 to index
    %c0_150 = arith.constant 0 : index
    %203 = vector.load %arg12[%202, %c0_150] : memref<64x128xf32, #tpu.memory_space<vmem>>, vector<8x128xf32>
    tpu.vector_store %arg12[%202, %c0_150], %198 {strides = array<i32>} : memref<64x128xf32, #tpu.memory_space<vmem>>, vector<8x128xf32>,
    %c8_i32_151 = arith.constant 8 : i32
    %c0_152 = arith.constant 0 : index
    %c0_153 = arith.constant 0 : index
    %204 = vector.load %arg12[%c0_152, %c0_153] : memref<64x128xf32, #tpu.memory_space<vmem>>, vector<64x128xf32>
    %c0_154 = arith.constant 0 : index
    %c0_155 = arith.constant 0 : index
    %205 = vector.load %arg6[%c0_154, %c0_155] : memref<128x1xf32, #tpu.memory_space<vmem>>, vector<128x1xf32>
    %cst_156 = arith.constant dense<0.000000e+00> : vector<64x1xf32>
    %206 = tpu.matmul %204, %205, %cst_156 {dimension_numbers = #tpu.dot_dimension_numbers<[1], [0], [0], [1], [0, 0, 1, 1], [], []>} : vector<64x128xf32>, vector<128x1xf32>, vector<64x1xf32> -> vector<64x1xf32>
    %c0_157 = arith.constant 0 : index
    %c0_158 = arith.constant 0 : index
    %207 = vector.load %arg7[%c0_157, %c0_158] : memref<1x1xf32, #tpu.memory_space<vmem>>, vector<1x1xf32>
    %208 = vector.broadcast %207 : vector<1x1xf32> to vector<64x1xf32>
    %209 = arith.addf %206, %208 : vector<64x1xf32>
    %210 = arith.negf %209 : vector<64x1xf32>
    %211 = math.exp %210 : vector<64x1xf32>
    %cst_159 = arith.constant 1.000000e+00 : f32
    %212 = vector.broadcast %cst_159 : f32 to vector<64x1xf32>
    %213 = arith.addf %212, %211 : vector<64x1xf32>
    %214 = arith.divf %212, %213 : vector<64x1xf32>
    %c0_160 = arith.constant 0 : index
    %c0_161 = arith.constant 0 : index
    %215 = vector.load %arg8[%c0_160, %c0_161] : memref<64x1xf32, #tpu.memory_space<vmem>>, vector<64x1xf32>
    tpu.vector_store %arg8[%c0_160, %c0_161], %214 {strides = array<i32>} : memref<64x1xf32, #tpu.memory_space<vmem>>, vector<64x1xf32>,
    %c0_162 = arith.constant 0 : index
    %c0_163 = arith.constant 0 : index
    %c0_164 = arith.constant 0 : index
    %216 = vector.load %arg11[%c0_162, %c0_163, %c0_164] : memref<2x8x128xf32, #tpu.memory_space<vmem>>, vector<2x8x128xf32>
    %c0_165 = arith.constant 0 : index
    %c0_166 = arith.constant 0 : index
    %c0_167 = arith.constant 0 : index
    %217 = vector.load %arg9[%c0_165, %c0_166, %c0_167] : memref<2x8x128xf32, #tpu.memory_space<vmem>>, vector<2x8x128xf32>
    tpu.vector_store %arg9[%c0_165, %c0_166, %c0_167], %216 {strides = array<i32>} : memref<2x8x128xf32, #tpu.memory_space<vmem>>, vector<2x8x128xf32>,
    return
  }
}

</mosaic_0001>

<bundles_post_ra>
// kernel: basic_rnn_forward.1
= control target key start
LH: loop header
LB: loop body
LE: loop exit
PB: predicated region body
PF: predicated region fallthrough
CT: control target
= control target key end

     0   :  { %vm122_vm0 = vcmask 1043456   ;;  %vm97_vm1 = vcmask 31744   ;;  %v1073_v38 = vmov 0.0   ;;  %vm966_vm5 = vcmask 7168   ;;  %s1941_s3 = inlined_call_operand.vmem [shape: f32[128,128], index: 3, kind: input, shape index: {}]   ;;  %s1942_s1 = inlined_call_operand.vmem [shape: f32[4,128], index: 1, kind: input, shape index: {}]   ;;  %s1943_s0 = inlined_call_operand.vmem [shape: f32[64,4], index: 0, kind: input, shape index: {}]   ;;  %s1944_s4 = inlined_call_operand.vmem [shape: f32[256,128], index: 4, kind: input, shape index: {}]   ;;  %s1945_s2 = inlined_call_operand.vmem [shape: f32[1,128], index: 2, kind: input, shape index: {}]   ;;  %s1946_s5 = inlined_call_operand.vmem [shape: f32[1,128], index: 5, kind: input, shape index: {}]   ;;  %s1947_s6 = inlined_call_operand.vmem [shape: f32[128,1], index: 6, kind: input, shape index: {}]   ;;  %s1948_s7 = inlined_call_operand.<no memory space> [shape: f32[1,1], index: 7, kind: input, shape index: {}]   ;;  %s1949_s9 = inlined_call_operand.vmem [shape: f32[2,8,128], index: 9, kind: output, shape index: {1}]   ;;  %s1950_s8 = inlined_call_operand.vmem [shape: f32[64,1], index: 8, kind: output, shape index: {0}]  }
   0x1   :  { %v1127_v0 = vld [vmem:[%s1941_s3 + $0x78] sm:$0xff]  ;;  %v1132_v1 = vld [vmem:[%s1941_s3 + $0x70] sm:$0xff]  ;;  %v1138_v2 = vld [vmem:[%s1941_s3 + $0x68] sm:$0xff] }
   0x2   :  { %177 = vmatpush.msra.mxu1 %v1127_v0  ;;  %v1144_v3 = vld [vmem:[%s1941_s3 + $0x60] sm:$0xff]  ;;  %v1156_v6 = vld [vmem:[%s1941_s3 + $0x58] sm:$0xff]  ;;  %v1167_v8 = vld [vmem:[%s1944_s4 + $0x70] sm:$0xff] }
   0x3   :  { %v92_v4 = vld [vmem:[%s1942_s1] sm:$0xf]  ;;  %v1162_v7 = vld [vmem:[%s1944_s4 + $0x78] sm:$0xff]  ;;  %v1174_v9 = vld [vmem:[%s1941_s3 + $0x50] sm:$0xff] }
   0x4   :  { %178 = vmatpush.msra.mxu1 %v1132_v1  ;;  %987 = vmatpush.msk.msra.mxu0 %vm122_vm0, %v92_v4  ;;  %v84_v5 = vld [vmem:[%s1943_s0] sm:$0xff]  ;;  %v1179_v10 = vld [vmem:[%s1944_s4 + $0x68] sm:$0xff]  ;;  %v1200_v13 = vld [vmem:[%s1944_s4 + $0xf8] sm:$0xff] }
   0x5   :  { %988 = vmatmul.msk.f32.vlgmr.msra.gmra.mxu0 %vm97_vm1, %v84_v5  ;;  %1004 = vmatpush.msk.msra.mxu2 %vm122_vm0, %v92_v4  ;;  %v1187_v11 = vld [vmem:[%s1941_s3 + $0x48] sm:$0xff]  ;;  %v1192_v12 = vld [vmem:[%s1944_s4 + $0x60] sm:$0xff]  ;;  %v1210_v15 = vld [vmem:[%s1944_s4 + $0x58] sm:$0xff] }
   0x6   :  { %179 = vmatpush.msra.mxu1 %v1138_v2  ;;  %205 = vmatpush.msra.mxu3 %v1162_v7  ;;  %v1205_v14 = vld [vmem:[%s1941_s3 + $0x40] sm:$0xff]  ;;  %v1219_v16 = vld [vmem:[%s1944_s4 + $0xf0] sm:$0xff]  ;;  %v1224_v17 = vld [vmem:[%s1941_s3 + $0x38] sm:$0xff] }
   0x7   :  { %275 = vmatpush.msrb.mxu0 %v1162_v7  ;;  %366 = vmatpush.msrb.mxu2 %v1200_v13  ;;  %v1229_v18 = vld [vmem:[%s1944_s4 + $0x50] sm:$0xff]  ;;  %v1238_v19 = vld [vmem:[%s1944_s4 + $0xe8] sm:$0xff]  ;;  %v1257_v22 = vld [vmem:[%s1944_s4 + $0xe0] sm:$0xff] }
   0x8   :  { %180 = vmatpush.msra.mxu1 %v1144_v3  ;;  %206 = vmatpush.msra.mxu3 %v1167_v8  ;;  %v1243_v20 = vld [vmem:[%s1941_s3 + $0x30] sm:$0xff]  ;;  %v1248_v21 = vld [vmem:[%s1944_s4 + $0x48] sm:$0xff]  ;;  %v1267_v24 = vld [vmem:[%s1944_s4 + $0x40] sm:$0xff] }
   0x9   :  { %276 = vmatpush.msrb.mxu0 %v1167_v8  ;;  %367 = vmatpush.msrb.mxu2 %v1219_v16  ;;  %v1262_v23 = vld [vmem:[%s1941_s3 + $0x28] sm:$0xff]  ;;  %v1276_v25 = vld [vmem:[%s1944_s4 + $0xd8] sm:$0xff]  ;;  %v1281_v26 = vld [vmem:[%s1941_s3 + $0x20] sm:$0xff] }
   0xa   :  { %181 = vmatpush.msra.mxu1 %v1156_v6  ;;  %207 = vmatpush.msra.mxu3 %v1179_v10  ;;  %v1286_v27 = vld [vmem:[%s1944_s4 + $0x38] sm:$0xff]  ;;  %v1295_v28 = vld [vmem:[%s1944_s4 + $0xd0] sm:$0xff]  ;;  %v1319_v32 = vld [vmem:[%s1944_s4 + $0x28] sm:$0xff] }
   0xb   :  { %277 = vmatpush.msrb.mxu0 %v1179_v10  ;;  %368 = vmatpush.msrb.mxu2 %v1238_v19  ;;  %v1300_v29 = vld [vmem:[%s1941_s3 + $0x18] sm:$0xff]  ;;  %v1305_v30 = vld [vmem:[%s1944_s4 + $0x30] sm:$0xff]  ;;  %v1327_v33 = vld [vmem:[%s1941_s3 + $0x8] sm:$0xff] }
   0xc   :  { %182 = vmatpush.msra.mxu1 %v1174_v9  ;;  %208 = vmatpush.msra.mxu3 %v1192_v12  ;;  %v1314_v31 = vld [vmem:[%s1941_s3 + $0x10] sm:$0xff]  ;;  %v1332_v34 = vld [vmem:[%s1944_s4 + $0x20] sm:$0xff]  ;;  %v1345_v36 = vld [vmem:[%s1944_s4 + $0x18] sm:$0xff] }
   0xd   :  { %278 = vmatpush.msrb.mxu0 %v1192_v12  ;;  %369 = vmatpush.msrb.mxu2 %v1257_v22  ;;  %v1340_v35 = vld [vmem:[%s1941_s3] sm:$0xff]  ;;  %v1353_v37 = vld [vmem:[%s1944_s4 + $0x10] sm:$0xff]  ;;  %v1362_v39 = vld [vmem:[%s1944_s4 + $0x8] sm:$0xff] }
   0xe   :  { %183 = vmatpush.msra.mxu1 %v1187_v11  ;;  %209 = vmatpush.msra.mxu3 %v1210_v15  ;;  %v1370_v40 = vld [vmem:[%s1944_s4] sm:$0xff]  ;;  %v1433_v41 = vld [vmem:[%s1944_s4 + $0xc8] sm:$0xff]  ;;  %v1447_v43 = vld [vmem:[%s1944_s4 + $0xb8] sm:$0xff] }
   0xf   :  { %279 = vmatpush.msrb.mxu0 %v1210_v15  ;;  %370 = vmatpush.msrb.mxu2 %v1276_v25  ;;  %v1440_v42 = vld [vmem:[%s1944_s4 + $0xc0] sm:$0xff]  ;;  %v1453_v44 = vld [vmem:[%s1944_s4 + $0xb0] sm:$0xff]  ;;  %v85_v45 = vld [vmem:[%s1943_s0 + $0x8] sm:$0xff] }
  0x10   :  { %184 = vmatpush.msra.mxu1 %v1205_v14  ;;  %210 = vmatpush.msra.mxu3 %v1229_v18  ;;  %v1462_v46 = vld [vmem:[%s1944_s4 + $0xa8] sm:$0xff]  ;;  %v1470_v47 = vld [vmem:[%s1944_s4 + $0xa0] sm:$0xff]  ;;  %v1479_v48 = vld [vmem:[%s1944_s4 + $0x98] sm:$0xff] }
  0x11   :  { %280 = vmatpush.msrb.mxu0 %v1229_v18  ;;  %371 = vmatpush.msrb.mxu2 %v1295_v28  ;;  %v1484_v49 = vld [vmem:[%s1944_s4 + $0x90] sm:$0xff]  ;;  %v1491_v50 = vld [vmem:[%s1944_s4 + $0x88] sm:$0xff]  ;;  %v1498_v51 = vld [vmem:[%s1944_s4 + $0x80] sm:$0xff] }
  0x12   :  { %185 = vmatpush.msra.mxu1 %v1224_v17  ;;  %211 = vmatpush.msra.mxu3 %v1248_v21  ;;  %v86_v52 = vld [vmem:[%s1943_s0 + $0x10] sm:$0xff]  ;;  %v1511_v53 = vld [vmem:[%s1945_s2] ss:$0 sm:$0xff]  ;;  %v87_v59 = vld [vmem:[%s1943_s0 + $0x18] sm:$0xff] }
  0x13   :  { %281 = vmatpush.msrb.mxu0 %v1248_v21  ;;  %372 = vmatpush.msrb.mxu2 %v1433_v41 }
  0x14   :  { %186 = vmatpush.msra.mxu1 %v1243_v20  ;;  %212 = vmatpush.msra.mxu3 %v1267_v24 }
  0x15   :  { %282 = vmatpush.msrb.mxu0 %v1267_v24  ;;  %373 = vmatpush.msrb.mxu2 %v1440_v42 }
  0x16   :  { %187 = vmatpush.msra.mxu1 %v1262_v23  ;;  %213 = vmatpush.msra.mxu3 %v1286_v27 }
  0x17   :  { %283 = vmatpush.msrb.mxu0 %v1286_v27  ;;  %374 = vmatpush.msrb.mxu2 %v1447_v43 }
  0x18   :  { %188 = vmatpush.msra.mxu1 %v1281_v26  ;;  %214 = vmatpush.msra.mxu3 %v1305_v30 }
  0x19   :  { %284 = vmatpush.msrb.mxu0 %v1305_v30  ;;  %375 = vmatpush.msrb.mxu2 %v1453_v44 }
  0x1a   :  { %189 = vmatpush.msra.mxu1 %v1300_v29  ;;  %215 = vmatpush.msra.mxu3 %v1319_v32 }
  0x1b   :  { %285 = vmatpush.msrb.mxu0 %v1319_v32  ;;  %376 = vmatpush.msrb.mxu2 %v1462_v46 }
  0x1c   :  { %190 = vmatpush.msra.mxu1 %v1314_v31  ;;  %216 = vmatpush.msra.mxu3 %v1332_v34 }
  0x1d   :  { %286 = vmatpush.msrb.mxu0 %v1332_v34  ;;  %377 = vmatpush.msrb.mxu2 %v1470_v47 }
  0x1e   :  { %191 = vmatpush.msra.mxu1 %v1327_v33  ;;  %217 = vmatpush.msra.mxu3 %v1345_v36 }
  0x1f   :  { %287 = vmatpush.msrb.mxu0 %v1345_v36  ;;  %378 = vmatpush.msrb.mxu2 %v1479_v48 }
  0x20   :  { %192 = vmatpush.msra.mxu1 %v1340_v35  ;;  %218 = vmatpush.msra.mxu3 %v1353_v37 }
  0x21   :  { %193 = vmatmul.f32.vlgmr.msra.gmra.mxu1 %v1073_v38  ;;  %288 = vmatpush.msrb.mxu0 %v1353_v37 }
  0x22   :  { %251 = vmatpush.msrb.mxu1 %v1127_v0  ;;  %219 = vmatpush.msra.mxu3 %v1362_v39 }
  0x23   :  { %289 = vmatpush.msrb.mxu0 %v1362_v39  ;;  %379 = vmatpush.msrb.mxu2 %v1484_v49 }
  0x24   :  { %252 = vmatpush.msrb.mxu1 %v1132_v1  ;;  %220 = vmatpush.msra.mxu3 %v1370_v40 }
  0x25   :  { %290 = vmatpush.msrb.mxu0 %v1370_v40  ;;  %380 = vmatpush.msrb.mxu2 %v1491_v50 }
  0x26   :  { %253 = vmatpush.msrb.mxu1 %v1138_v2  ;;  %225 = vmatpush.msrb.mxu3 %v1200_v13 }
  0x27   :  { %322 = vmatpush.msra.mxu0 %v1127_v0  ;;  %381 = vmatpush.msrb.mxu2 %v1498_v51 }
  0x28   :  { %254 = vmatpush.msrb.mxu1 %v1144_v3  ;;  %226 = vmatpush.msrb.mxu3 %v1219_v16 }
  0x29   :  { %323 = vmatpush.msra.mxu0 %v1132_v1 }
  0x2a   :  { %255 = vmatpush.msrb.mxu1 %v1156_v6  ;;  %227 = vmatpush.msrb.mxu3 %v1238_v19 }
  0x2b   :  { %324 = vmatpush.msra.mxu0 %v1138_v2 }
  0x2c   :  { %256 = vmatpush.msrb.mxu1 %v1174_v9  ;;  %228 = vmatpush.msrb.mxu3 %v1257_v22 }
  0x2d   :  { %325 = vmatpush.msra.mxu0 %v1144_v3 }
  0x2e   :  { %257 = vmatpush.msrb.mxu1 %v1187_v11  ;;  %229 = vmatpush.msrb.mxu3 %v1276_v25 }
  0x2f   :  { %326 = vmatpush.msra.mxu0 %v1156_v6 }
  0x30   :  { %258 = vmatpush.msrb.mxu1 %v1205_v14  ;;  %230 = vmatpush.msrb.mxu3 %v1295_v28 }
  0x31   :  { %327 = vmatpush.msra.mxu0 %v1174_v9 }
  0x32   :  { %259 = vmatpush.msrb.mxu1 %v1224_v17  ;;  %231 = vmatpush.msrb.mxu3 %v1433_v41 }
  0x33   :  { %328 = vmatpush.msra.mxu0 %v1187_v11 }
  0x34   :  { %260 = vmatpush.msrb.mxu1 %v1243_v20  ;;  %232 = vmatpush.msrb.mxu3 %v1440_v42 }
  0x35   :  { %329 = vmatpush.msra.mxu0 %v1205_v14 }
  0x36   :  { %261 = vmatpush.msrb.mxu1 %v1262_v23  ;;  %233 = vmatpush.msrb.mxu3 %v1447_v43 }
  0x37   :  { %330 = vmatpush.msra.mxu0 %v1224_v17 }
  0x38   :  { %262 = vmatpush.msrb.mxu1 %v1281_v26  ;;  %989 = vmatmul.msk.f32.gmra.mxu0 %vm97_vm1, %v85_v45 }
  0x39   :  { %331 = vmatpush.msra.mxu0 %v1243_v20  ;;  %234 = vmatpush.msrb.mxu3 %v1453_v44 }
  0x3a   :  { %263 = vmatpush.msrb.mxu1 %v1300_v29 }
  0x3b   :  { %332 = vmatpush.msra.mxu0 %v1262_v23  ;;  %235 = vmatpush.msrb.mxu3 %v1462_v46 }
  0x3c   :  { %264 = vmatpush.msrb.mxu1 %v1314_v31 }
  0x3d   :  { %333 = vmatpush.msra.mxu0 %v1281_v26  ;;  %236 = vmatpush.msrb.mxu3 %v1470_v47 }
  0x3e   :  { %265 = vmatpush.msrb.mxu1 %v1327_v33 }
  0x3f   :  { %334 = vmatpush.msra.mxu0 %v1300_v29  ;;  %237 = vmatpush.msrb.mxu3 %v1479_v48 }
  0x40   :  { %266 = vmatpush.msrb.mxu1 %v1340_v35  ;;  %990 = vmatmul.msk.f32.gmra.mxu0 %vm97_vm1, %v86_v52 }
  0x41   :  { %335 = vmatpush.msra.mxu0 %v1314_v31  ;;  %238 = vmatpush.msrb.mxu3 %v1484_v49 }
  0x42   :  { %346 = vmatpush.msra.mxu1 %v1162_v7 }
  0x43   :  { %336 = vmatpush.msra.mxu0 %v1327_v33  ;;  %239 = vmatpush.msrb.mxu3 %v1491_v50 }
  0x44   :  { %347 = vmatpush.msra.mxu1 %v1167_v8 }
  0x45   :  { %337 = vmatpush.msra.mxu0 %v1340_v35  ;;  %240 = vmatpush.msrb.mxu3 %v1498_v51 }
  0x46   :  { %348 = vmatpush.msra.mxu1 %v1179_v10 }
  0x48   :  { %349 = vmatpush.msra.mxu1 %v1192_v12  ;;  %991 = vmatmul.msk.f32.gmra.mxu0 %vm97_vm1, %v87_v59 }
  0x4a   :  { %350 = vmatpush.msra.mxu1 %v1210_v15 }
  0x4c   :  { %351 = vmatpush.msra.mxu1 %v1229_v18 }
  0x4e   :  { %352 = vmatpush.msra.mxu1 %v1248_v21 }
  0x50   :  { %353 = vmatpush.msra.mxu1 %v1267_v24 }
  0x52   :  { %354 = vmatpush.msra.mxu1 %v1286_v27 }
  0x54   :  { %355 = vmatpush.msra.mxu1 %v1305_v30 }
  0x56   :  { %356 = vmatpush.msra.mxu1 %v1319_v32 }
  0x58   :  { %357 = vmatpush.msra.mxu1 %v1332_v34 }
  0x5a   :  { %358 = vmatpush.msra.mxu1 %v1345_v36 }
  0x5c   :  { %359 = vmatpush.msra.mxu1 %v1353_v37 }
  0x5e   :  { %360 = vmatpush.msra.mxu1 %v1362_v39 }
  0x60   :  { %361 = vmatpush.msra.mxu1 %v1370_v40 }
  0x82   :  { %v143_v54 = vpop.f32.mrf.mxu0 }
  0x83   :  { %v144_v55 = vadd.f32 %v1511_v53, %v143_v54 }
  0x9e   :  { %v194_v56 = vpop.f32.mrf.mxu1 }
  0x9f   :  { %v197_v57 = vadd.f32 %v194_v56, %v144_v55  ;;  %v88_v56 = vld [vmem:[%s1943_s0 + $0x20] sm:$0xff] }
  0xa0   :  { %992 = vmatmul.msk.f32.vlgmr.msra.gmra.mxu2 %vm97_vm1, %v88_v56 }
  0xa1   :  { %1009 = vtanh.f32 %v197_v57  ;;  %464 = vmatpush.msra.mxu2 %v1127_v0  ;;  %v89_v57 = vld [vmem:[%s1943_s0 + $0x28] sm:$0xff] }
  0xa3   :  { %465 = vmatpush.msra.mxu2 %v1132_v1 }
  0xa5   :  { %466 = vmatpush.msra.mxu2 %v1138_v2 }
  0xa7   :  { %v1010_v58 = vpop.eup %1009  ;;  %467 = vmatpush.msra.mxu2 %v1144_v3 }
  0xa8   :  { %221 = vmatmul.f32.vlgmr.msra.gmra.mxu3 %v1010_v58  ;;  %267 = vmatmul.f32.vlgmr.msrb.gmra.mxu1 %v1010_v58  ;;  %v90_v58 = vld [vmem:[%s1943_s0 + $0x30] sm:$0xff] }
  0xa9   :  { %295 = vmatpush.msra.mxu3 %v1200_v13  ;;  %437 = vmatpush.msrb.mxu1 %v1200_v13 }
  0xaa   :  { %468 = vmatpush.msra.mxu2 %v1156_v6 }
  0xab   :  { %296 = vmatpush.msra.mxu3 %v1219_v16  ;;  %438 = vmatpush.msrb.mxu1 %v1219_v16 }
  0xac   :  { %469 = vmatpush.msra.mxu2 %v1174_v9 }
  0xad   :  { %297 = vmatpush.msra.mxu3 %v1238_v19  ;;  %439 = vmatpush.msrb.mxu1 %v1238_v19 }
  0xae   :  { %470 = vmatpush.msra.mxu2 %v1187_v11 }
  0xaf   :  { %298 = vmatpush.msra.mxu3 %v1257_v22  ;;  %440 = vmatpush.msrb.mxu1 %v1257_v22 }
  0xb0   :  { %241 = vmatmul.f32.vlgmr.msrb.gmra.mxu3 %v1073_v38  ;;  %v1571_v38 = vld [vmem:[%s1946_s5] ss:$0 sm:$0xff]  ;;  %471 = vmatpush.msra.mxu2 %v1205_v14 }
  0xb1   :  { %299 = vmatpush.msra.mxu3 %v1276_v25  ;;  %441 = vmatpush.msrb.mxu1 %v1276_v25 }
  0xb2   :  { %472 = vmatpush.msra.mxu2 %v1224_v17 }
  0xb3   :  { %300 = vmatpush.msra.mxu3 %v1295_v28  ;;  %442 = vmatpush.msrb.mxu1 %v1295_v28 }
  0xb4   :  { %473 = vmatpush.msra.mxu2 %v1243_v20 }
  0xb5   :  { %301 = vmatpush.msra.mxu3 %v1433_v41  ;;  %443 = vmatpush.msrb.mxu1 %v1433_v41  ;;  %v146_v60 = vpop.f32.mrf.mxu0 }
  0xb6   :  { %v147_v61 = vadd.f32 %v1511_v53, %v146_v60  ;;  %474 = vmatpush.msra.mxu2 %v1262_v23  ;;  %v91_v60 = vld [vmem:[%s1943_s0 + $0x38] sm:$0xff] }
  0xb7   :  { %302 = vmatpush.msra.mxu3 %v1440_v42  ;;  %444 = vmatpush.msrb.mxu1 %v1440_v42 }
  0xb8   :  { %475 = vmatpush.msra.mxu2 %v1281_v26 }
  0xb9   :  { %303 = vmatpush.msra.mxu3 %v1447_v43  ;;  %445 = vmatpush.msrb.mxu1 %v1447_v43 }
  0xba   :  { %476 = vmatpush.msra.mxu2 %v1300_v29 }
  0xbb   :  { %304 = vmatpush.msra.mxu3 %v1453_v44  ;;  %446 = vmatpush.msrb.mxu1 %v1453_v44 }
  0xbc   :  { %477 = vmatpush.msra.mxu2 %v1314_v31 }
  0xbd   :  { %305 = vmatpush.msra.mxu3 %v1462_v46  ;;  %447 = vmatpush.msrb.mxu1 %v1462_v46  ;;  %v149_v59 = vpop.f32.mrf.mxu0 }
  0xbe   :  { %478 = vmatpush.msra.mxu2 %v1327_v33 }
  0xbf   :  { %306 = vmatpush.msra.mxu3 %v1470_v47  ;;  %448 = vmatpush.msrb.mxu1 %v1470_v47 }
  0xc0   :  { %479 = vmatpush.msra.mxu2 %v1340_v35 }
  0xc1   :  { %307 = vmatpush.msra.mxu3 %v1479_v48  ;;  %449 = vmatpush.msrb.mxu1 %v1479_v48 }
  0xc2   :  { %993 = vmatmul.msk.f32.gmra.mxu2 %vm97_vm1, %v89_v57 }
  0xc3   :  { %308 = vmatpush.msra.mxu3 %v1484_v49  ;;  %450 = vmatpush.msrb.mxu1 %v1484_v49 }
  0xc5   :  { %309 = vmatpush.msra.mxu3 %v1491_v50  ;;  %451 = vmatpush.msrb.mxu1 %v1491_v50 }
  0xc7   :  { %310 = vmatpush.msra.mxu3 %v1498_v51  ;;  %452 = vmatpush.msrb.mxu1 %v1498_v51 }
  0xc9   :  { %393 = vmatpush.msrb.mxu3 %v1127_v0 }
  0xca   :  { %994 = vmatmul.msk.f32.gmra.mxu2 %vm97_vm1, %v90_v58 }
  0xcb   :  { %394 = vmatpush.msrb.mxu3 %v1132_v1 }
  0xcd   :  { %395 = vmatpush.msrb.mxu3 %v1138_v2 }
  0xcf   :  { %396 = vmatpush.msrb.mxu3 %v1144_v3 }
  0xd1   :  { %397 = vmatpush.msrb.mxu3 %v1156_v6 }
  0xd2   :  { %995 = vmatmul.msk.f32.gmra.mxu2 %vm97_vm1, %v91_v60 }
  0xd3   :  { %398 = vmatpush.msrb.mxu3 %v1174_v9 }
  0xd5   :  { %399 = vmatpush.msrb.mxu3 %v1187_v11 }
  0xd7   :  { %400 = vmatpush.msrb.mxu3 %v1205_v14 }
  0xd9   :  { %401 = vmatpush.msrb.mxu3 %v1224_v17 }
  0xdb   :  { %402 = vmatpush.msrb.mxu3 %v1243_v20 }
  0xdd   :  { %403 = vmatpush.msrb.mxu3 %v1262_v23 }
  0xdf   :  { %404 = vmatpush.msrb.mxu3 %v1281_v26 }
  0xe1   :  { %405 = vmatpush.msrb.mxu3 %v1300_v29 }
  0xe3   :  { %406 = vmatpush.msrb.mxu3 %v1314_v31 }
  0xe5   :  { %407 = vmatpush.msrb.mxu3 %v1327_v33 }
  0xe7   :  { %408 = vmatpush.msrb.mxu3 %v1340_v35 }
 0x123   :  { %v1712_v58 = vpop.f32.mrf.mxu2 }
 0x125   :  { %v268_v62 = vpop.f32.mrf.mxu1 }
 0x126   :  { %v271_v63 = vadd.f32 %v268_v62, %v147_v61  ;;  %v1656_v61 = vpop.f32.mrf.mxu0 }
 0x128   :  { %1011 = vtanh.f32 %v271_v63  ;;  %v150_v63 = vadd.f32 %v1511_v53, %v149_v59 }
 0x12b   :  { %v222_v4 = vpop.f32.mrf.mxu3 }
 0x12c   :  { %v223_v45 = vadd.f32 %v1571_v38, %v222_v4 }
 0x12e   :  { %v1012_v5 = vpop.eup %1011 }
 0x12f   :  { %291 = vmatmul.f32.vlgmr.msrb.gmra.mxu0 %v1012_v5 }
 0x130   :  { %417 = vmatpush.msrb.mxu0 %v1162_v7 }
 0x132   :  { %418 = vmatpush.msrb.mxu0 %v1167_v8 }
 0x133   :  { %v242_v52 = vpop.f32.mrf.mxu3 }
 0x134   :  { %v243_v54 = vadd.f32 %v242_v52, %v223_v45  ;;  %419 = vmatpush.msrb.mxu0 %v1179_v10 }
 0x136   :  { %1013 = vtanh.f32 %v243_v54  ;;  %420 = vmatpush.msrb.mxu0 %v1192_v12 }
 0x137   :  { %338 = vmatmul.f32.vlgmr.msra.gmra.mxu0 %v1012_v5 }
 0x138   :  { %421 = vmatpush.msrb.mxu0 %v1210_v15 }
 0x13a   :  { %422 = vmatpush.msrb.mxu0 %v1229_v18 }
 0x13c   :  { %v1580_v55 = vpop.eup %1013  ;;  %423 = vmatpush.msrb.mxu0 %v1248_v21 }
 0x13d   :  { %311 = vmatmul.f32.vlgmr.msra.gmra.mxu3 %v1580_v55 }
 0x13e   :  { %424 = vmatpush.msrb.mxu0 %v1267_v24  ;;  %488 = vmatpush.msra.mxu3 %v1162_v7 }
 0x140   :  { %425 = vmatpush.msrb.mxu0 %v1286_v27  ;;  %489 = vmatpush.msra.mxu3 %v1167_v8 }
 0x142   :  { %426 = vmatpush.msrb.mxu0 %v1305_v30  ;;  %490 = vmatpush.msra.mxu3 %v1179_v10 }
 0x144   :  { %427 = vmatpush.msrb.mxu0 %v1319_v32  ;;  %491 = vmatpush.msra.mxu3 %v1192_v12 }
 0x145   :  { %v1714_v59 = vpop.f32.mrf.mxu2 }
 0x146   :  { %428 = vmatpush.msrb.mxu0 %v1332_v34  ;;  %492 = vmatpush.msra.mxu3 %v1210_v15 }
 0x148   :  { %429 = vmatpush.msrb.mxu0 %v1345_v36  ;;  %493 = vmatpush.msra.mxu3 %v1229_v18 }
 0x14a   :  { %430 = vmatpush.msrb.mxu0 %v1353_v37  ;;  %494 = vmatpush.msra.mxu3 %v1248_v21 }
 0x14c   :  { %431 = vmatpush.msrb.mxu0 %v1362_v39  ;;  %495 = vmatpush.msra.mxu3 %v1267_v24 }
 0x14d   :  { %v1716_v60 = vpop.f32.mrf.mxu2 }
 0x14e   :  { %432 = vmatpush.msrb.mxu0 %v1370_v40  ;;  %496 = vmatpush.msra.mxu3 %v1286_v27 }
 0x150   :  { %508 = vmatpush.msra.mxu0 %v1200_v13  ;;  %497 = vmatpush.msra.mxu3 %v1305_v30 }
 0x152   :  { %509 = vmatpush.msra.mxu0 %v1219_v16  ;;  %498 = vmatpush.msra.mxu3 %v1319_v32 }
 0x154   :  { %510 = vmatpush.msra.mxu0 %v1238_v19  ;;  %499 = vmatpush.msra.mxu3 %v1332_v34 }
 0x156   :  { %511 = vmatpush.msra.mxu0 %v1257_v22  ;;  %500 = vmatpush.msra.mxu3 %v1345_v36 }
 0x158   :  { %512 = vmatpush.msra.mxu0 %v1276_v25  ;;  %501 = vmatpush.msra.mxu3 %v1353_v37 }
 0x15a   :  { %513 = vmatpush.msra.mxu0 %v1295_v28  ;;  %502 = vmatpush.msra.mxu3 %v1362_v39 }
 0x15c   :  { %514 = vmatpush.msra.mxu0 %v1433_v41  ;;  %503 = vmatpush.msra.mxu3 %v1370_v40 }
 0x15e   :  { %515 = vmatpush.msra.mxu0 %v1440_v42 }
 0x160   :  { %516 = vmatpush.msra.mxu0 %v1447_v43 }
 0x162   :  { %517 = vmatpush.msra.mxu0 %v1453_v44 }
 0x164   :  { %518 = vmatpush.msra.mxu0 %v1462_v46 }
 0x166   :  { %519 = vmatpush.msra.mxu0 %v1470_v47 }
 0x168   :  { %520 = vmatpush.msra.mxu0 %v1479_v48 }
 0x16a   :  { %521 = vmatpush.msra.mxu0 %v1484_v49 }
 0x16c   :  { %522 = vmatpush.msra.mxu0 %v1491_v50 }
 0x16e   :  { %523 = vmatpush.msra.mxu0 %v1498_v51 }
 0x1ac   :  { %v292_v62 = vpop.f32.mrf.mxu0 }
 0x1ad   :  { %v293_v52 = vadd.f32 %v1571_v38, %v292_v62  ;;  %v153_v62 = vadd.f32 %v1511_v53, %v1656_v61 }
 0x1b4   :  { %v339_v4 = vpop.f32.mrf.mxu0 }
 0x1b5   :  { %v342_v5 = vadd.f32 %v339_v4, %v150_v63 }
 0x1b7   :  { %1015 = vtanh.f32 %v342_v5  ;;  %v1720_v5 = vpop.f32.mrf.mxu2 }
 0x1bd   :  { %v1016_v45 = vpop.eup %1015 }
 0x1be   :  { %362 = vmatmul.f32.vlgmr.msra.gmra.mxu1 %v1016_v45  ;;  %409 = vmatmul.f32.vlgmr.msrb.gmra.mxu3 %v1016_v45 }
 0x1bf   :  { %535 = vmatpush.msra.mxu1 %v1127_v0  ;;  %579 = vmatpush.msrb.mxu3 %v1200_v13 }
 0x1c0   :  { %v312_v54 = vpop.f32.mrf.mxu3 }
 0x1c1   :  { %v313_v56 = vadd.f32 %v312_v54, %v293_v52  ;;  %536 = vmatpush.msra.mxu1 %v1132_v1  ;;  %580 = vmatpush.msrb.mxu3 %v1219_v16 }
 0x1c3   :  { %1017 = vtanh.f32 %v313_v56  ;;  %537 = vmatpush.msra.mxu1 %v1138_v2  ;;  %581 = vmatpush.msrb.mxu3 %v1238_v19 }
 0x1c5   :  { %538 = vmatpush.msra.mxu1 %v1144_v3  ;;  %582 = vmatpush.msrb.mxu3 %v1257_v22 }
 0x1c7   :  { %539 = vmatpush.msra.mxu1 %v1156_v6  ;;  %583 = vmatpush.msrb.mxu3 %v1276_v25 }
 0x1c9   :  { %v1671_v57 = vpop.eup %1017  ;;  %540 = vmatpush.msra.mxu1 %v1174_v9  ;;  %584 = vmatpush.msrb.mxu3 %v1295_v28 }
 0x1ca   :  { %1952 = vst [vmem:[#allocation6_spill] sm:$0xff] %v1671_v57  ;;  %382 = vmatmul.f32.vlgmr.msrb.gmra.mxu2 %v1671_v57 }
 0x1cb   :  { %541 = vmatpush.msra.mxu1 %v1187_v11  ;;  %559 = vmatpush.msrb.mxu2 %v1162_v7 }
 0x1cc   :  { %585 = vmatpush.msrb.mxu3 %v1433_v41 }
 0x1cd   :  { %542 = vmatpush.msra.mxu1 %v1205_v14  ;;  %560 = vmatpush.msrb.mxu2 %v1167_v8 }
 0x1ce   :  { %586 = vmatpush.msrb.mxu3 %v1440_v42 }
 0x1cf   :  { %543 = vmatpush.msra.mxu1 %v1224_v17  ;;  %561 = vmatpush.msrb.mxu2 %v1179_v10 }
 0x1d0   :  { %587 = vmatpush.msrb.mxu3 %v1447_v43 }
 0x1d1   :  { %544 = vmatpush.msra.mxu1 %v1243_v20  ;;  %562 = vmatpush.msrb.mxu2 %v1192_v12 }
 0x1d2   :  { %588 = vmatpush.msrb.mxu3 %v1453_v44 }
 0x1d3   :  { %545 = vmatpush.msra.mxu1 %v1262_v23  ;;  %563 = vmatpush.msrb.mxu2 %v1210_v15 }
 0x1d4   :  { %589 = vmatpush.msrb.mxu3 %v1462_v46 }
 0x1d5   :  { %546 = vmatpush.msra.mxu1 %v1281_v26  ;;  %564 = vmatpush.msrb.mxu2 %v1229_v18 }
 0x1d6   :  { %590 = vmatpush.msrb.mxu3 %v1470_v47 }
 0x1d7   :  { %547 = vmatpush.msra.mxu1 %v1300_v29  ;;  %565 = vmatpush.msrb.mxu2 %v1248_v21 }
 0x1d8   :  { %591 = vmatpush.msrb.mxu3 %v1479_v48 }
 0x1d9   :  { %548 = vmatpush.msra.mxu1 %v1314_v31  ;;  %566 = vmatpush.msrb.mxu2 %v1267_v24 }
 0x1da   :  { %592 = vmatpush.msrb.mxu3 %v1484_v49 }
 0x1db   :  { %549 = vmatpush.msra.mxu1 %v1327_v33  ;;  %567 = vmatpush.msrb.mxu2 %v1286_v27 }
 0x1dc   :  { %593 = vmatpush.msrb.mxu3 %v1491_v50 }
 0x1dd   :  { %550 = vmatpush.msra.mxu1 %v1340_v35  ;;  %568 = vmatpush.msrb.mxu2 %v1305_v30 }
 0x1de   :  { %594 = vmatpush.msrb.mxu3 %v1498_v51 }
 0x1df   :  { %569 = vmatpush.msrb.mxu2 %v1319_v32 }
 0x1e1   :  { %570 = vmatpush.msrb.mxu2 %v1332_v34 }
 0x1e3   :  { %571 = vmatpush.msrb.mxu2 %v1345_v36 }
 0x1e5   :  { %572 = vmatpush.msrb.mxu2 %v1353_v37 }
 0x1e7   :  { %573 = vmatpush.msrb.mxu2 %v1362_v39 }
 0x1e9   :  { %574 = vmatpush.msrb.mxu2 %v1370_v40 }
 0x23b   :  { %v363_v45 = vpop.f32.mrf.mxu1 }
 0x23c   :  { %v364_v54 = vadd.f32 %v1571_v38, %v363_v45 }
 0x241   :  { %v410_v63 = vpop.f32.mrf.mxu3 }
 0x242   :  { %v413_v4 = vadd.f32 %v410_v63, %v153_v62 }
 0x244   :  { %1019 = vtanh.f32 %v413_v4 }
 0x24a   :  { %v1020_v52 = vpop.eup %1019 }
 0x24b   :  { %433 = vmatmul.f32.vlgmr.msrb.gmra.mxu0 %v1020_v52  ;;  %480 = vmatmul.f32.vlgmr.msra.gmra.mxu2 %v1020_v52 }
 0x24c   :  { %606 = vmatpush.msrb.mxu0 %v1127_v0  ;;  %650 = vmatpush.msra.mxu2 %v1200_v13 }
 0x24d   :  { %v383_v56 = vpop.f32.mrf.mxu2 }
 0x24e   :  { %v384_v57 = vadd.f32 %v383_v56, %v364_v54  ;;  %607 = vmatpush.msrb.mxu0 %v1132_v1  ;;  %651 = vmatpush.msra.mxu2 %v1219_v16 }
 0x250   :  { %1021 = vtanh.f32 %v384_v57  ;;  %608 = vmatpush.msrb.mxu0 %v1138_v2  ;;  %652 = vmatpush.msra.mxu2 %v1238_v19  ;;  %v156_v57 = vadd.f32 %v1511_v53, %v1712_v58 }
 0x252   :  { %609 = vmatpush.msrb.mxu0 %v1144_v3  ;;  %653 = vmatpush.msra.mxu2 %v1257_v22 }
 0x254   :  { %610 = vmatpush.msrb.mxu0 %v1156_v6  ;;  %654 = vmatpush.msra.mxu2 %v1276_v25 }
 0x256   :  { %v1733_v61 = vpop.eup %1021  ;;  %611 = vmatpush.msrb.mxu0 %v1174_v9  ;;  %655 = vmatpush.msra.mxu2 %v1295_v28 }
 0x257   :  { %453 = vmatmul.f32.vlgmr.msrb.gmra.mxu1 %v1733_v61 }
 0x258   :  { %612 = vmatpush.msrb.mxu0 %v1187_v11  ;;  %630 = vmatpush.msrb.mxu1 %v1162_v7 }
 0x259   :  { %656 = vmatpush.msra.mxu2 %v1433_v41 }
 0x25a   :  { %613 = vmatpush.msrb.mxu0 %v1205_v14  ;;  %631 = vmatpush.msrb.mxu1 %v1167_v8 }
 0x25b   :  { %657 = vmatpush.msra.mxu2 %v1440_v42 }
 0x25c   :  { %614 = vmatpush.msrb.mxu0 %v1224_v17  ;;  %632 = vmatpush.msrb.mxu1 %v1179_v10 }
 0x25d   :  { %658 = vmatpush.msra.mxu2 %v1447_v43 }
 0x25e   :  { %615 = vmatpush.msrb.mxu0 %v1243_v20  ;;  %633 = vmatpush.msrb.mxu1 %v1192_v12 }
 0x25f   :  { %659 = vmatpush.msra.mxu2 %v1453_v44 }
 0x260   :  { %616 = vmatpush.msrb.mxu0 %v1262_v23  ;;  %634 = vmatpush.msrb.mxu1 %v1210_v15 }
 0x261   :  { %660 = vmatpush.msra.mxu2 %v1462_v46 }
 0x262   :  { %617 = vmatpush.msrb.mxu0 %v1281_v26  ;;  %635 = vmatpush.msrb.mxu1 %v1229_v18 }
 0x263   :  { %661 = vmatpush.msra.mxu2 %v1470_v47 }
 0x264   :  { %618 = vmatpush.msrb.mxu0 %v1300_v29  ;;  %636 = vmatpush.msrb.mxu1 %v1248_v21 }
 0x265   :  { %662 = vmatpush.msra.mxu2 %v1479_v48 }
 0x266   :  { %619 = vmatpush.msrb.mxu0 %v1314_v31  ;;  %637 = vmatpush.msrb.mxu1 %v1267_v24 }
 0x267   :  { %663 = vmatpush.msra.mxu2 %v1484_v49 }
 0x268   :  { %620 = vmatpush.msrb.mxu0 %v1327_v33  ;;  %638 = vmatpush.msrb.mxu1 %v1286_v27 }
 0x269   :  { %664 = vmatpush.msra.mxu2 %v1491_v50 }
 0x26a   :  { %621 = vmatpush.msrb.mxu0 %v1340_v35  ;;  %639 = vmatpush.msrb.mxu1 %v1305_v30 }
 0x26b   :  { %665 = vmatpush.msra.mxu2 %v1498_v51 }
 0x26c   :  { %640 = vmatpush.msrb.mxu1 %v1319_v32 }
 0x26e   :  { %641 = vmatpush.msrb.mxu1 %v1332_v34 }
 0x270   :  { %642 = vmatpush.msrb.mxu1 %v1345_v36 }
 0x272   :  { %643 = vmatpush.msrb.mxu1 %v1353_v37 }
 0x274   :  { %644 = vmatpush.msrb.mxu1 %v1362_v39 }
 0x276   :  { %645 = vmatpush.msrb.mxu1 %v1370_v40 }
 0x2c8   :  { %v434_v4 = vpop.f32.mrf.mxu0 }
 0x2c9   :  { %v435_v45 = vadd.f32 %v1571_v38, %v434_v4 }
 0x2ce   :  { %v481_v62 = vpop.f32.mrf.mxu2 }
 0x2cf   :  { %v484_v63 = vadd.f32 %v481_v62, %v156_v57 }
 0x2d1   :  { %1023 = vtanh.f32 %v484_v63 }
 0x2d4   :  { %v454_v52 = vpop.f32.mrf.mxu1 }
 0x2d5   :  { %v455_v54 = vadd.f32 %v454_v52, %v435_v45 }
 0x2d7   :  { %v1024_v56 = vpop.eup %1023  ;;  %1025 = vtanh.f32 %v455_v54 }
 0x2d8   :  { %504 = vmatmul.f32.vlgmr.msra.gmra.mxu3 %v1024_v56  ;;  %551 = vmatmul.f32.vlgmr.msra.gmra.mxu1 %v1024_v56 }
 0x2d9   :  { %677 = vmatpush.msra.mxu3 %v1127_v0  ;;  %721 = vmatpush.msra.mxu1 %v1200_v13  ;;  %v159_v0 = vadd.f32 %v1511_v53, %v1714_v59  ;;  %v766_v13 = vld [vmem:[%s1947_s6 + $0x68] sm:$0xff] }
 0x2db   :  { %678 = vmatpush.msra.mxu3 %v1132_v1  ;;  %722 = vmatpush.msra.mxu1 %v1219_v16  ;;  %v763_v16 = vld [vmem:[%s1947_s6 + $0x50] sm:$0xff] }
 0x2dd   :  { %v1781_v58 = vpop.eup %1025  ;;  %679 = vmatpush.msra.mxu3 %v1138_v2  ;;  %723 = vmatpush.msra.mxu1 %v1238_v19  ;;  %v760_v19 = vld [vmem:[%s1947_s6 + $0x38] sm:$0xff] }
 0x2de   :  { %524 = vmatmul.f32.vlgmr.msra.gmra.mxu0 %v1781_v58 }
 0x2df   :  { %680 = vmatpush.msra.mxu3 %v1144_v3  ;;  %701 = vmatpush.msra.mxu0 %v1162_v7 }
 0x2e0   :  { %724 = vmatpush.msra.mxu1 %v1257_v22  ;;  %v757_v22 = vld [vmem:[%s1947_s6 + $0x20] sm:$0xff] }
 0x2e1   :  { %681 = vmatpush.msra.mxu3 %v1156_v6  ;;  %702 = vmatpush.msra.mxu0 %v1167_v8 }
 0x2e2   :  { %725 = vmatpush.msra.mxu1 %v1276_v25  ;;  %v754_v25 = vld [vmem:[%s1947_s6 + $0x8] sm:$0xff] }
 0x2e3   :  { %682 = vmatpush.msra.mxu3 %v1174_v9  ;;  %703 = vmatpush.msra.mxu0 %v1179_v10 }
 0x2e4   :  { %726 = vmatpush.msra.mxu1 %v1295_v28 }
 0x2e5   :  { %683 = vmatpush.msra.mxu3 %v1187_v11  ;;  %704 = vmatpush.msra.mxu0 %v1192_v12  ;;  %v768_v11 = vld [vmem:[%s1947_s6 + $0x78] sm:$0xff]  ;;  %v767_v12 = vld [vmem:[%s1947_s6 + $0x70] sm:$0xff] }
 0x2e6   :  { %727 = vmatpush.msra.mxu1 %v1433_v41 }
 0x2e7   :  { %684 = vmatpush.msra.mxu3 %v1205_v14  ;;  %705 = vmatpush.msra.mxu0 %v1210_v15  ;;  %v765_v14 = vld [vmem:[%s1947_s6 + $0x60] sm:$0xff]  ;;  %v764_v15 = vld [vmem:[%s1947_s6 + $0x58] sm:$0xff] }
 0x2e8   :  { %728 = vmatpush.msra.mxu1 %v1440_v42 }
 0x2e9   :  { %685 = vmatpush.msra.mxu3 %v1224_v17  ;;  %706 = vmatpush.msra.mxu0 %v1229_v18  ;;  %v762_v17 = vld [vmem:[%s1947_s6 + $0x48] sm:$0xff]  ;;  %v761_v18 = vld [vmem:[%s1947_s6 + $0x40] sm:$0xff] }
 0x2ea   :  { %729 = vmatpush.msra.mxu1 %v1447_v43 }
 0x2eb   :  { %686 = vmatpush.msra.mxu3 %v1243_v20  ;;  %707 = vmatpush.msra.mxu0 %v1248_v21  ;;  %v759_v20 = vld [vmem:[%s1947_s6 + $0x30] sm:$0xff]  ;;  %v758_v21 = vld [vmem:[%s1947_s6 + $0x28] sm:$0xff] }
 0x2ec   :  { %730 = vmatpush.msra.mxu1 %v1453_v44 }
 0x2ed   :  { %687 = vmatpush.msra.mxu3 %v1262_v23  ;;  %708 = vmatpush.msra.mxu0 %v1267_v24  ;;  %v756_v23 = vld [vmem:[%s1947_s6 + $0x18] sm:$0xff]  ;;  %v755_v24 = vld [vmem:[%s1947_s6 + $0x10] sm:$0xff] }
 0x2ee   :  { %731 = vmatpush.msra.mxu1 %v1462_v46 }
 0x2ef   :  { %688 = vmatpush.msra.mxu3 %v1281_v26  ;;  %709 = vmatpush.msra.mxu0 %v1286_v27  ;;  %v753_v26 = vld [vmem:[%s1947_s6] sm:$0xff]  ;;  %v162_v27 = vadd.f32 %v1511_v53, %v1716_v60 }
 0x2f0   :  { %732 = vmatpush.msra.mxu1 %v1470_v47 }
 0x2f1   :  { %689 = vmatpush.msra.mxu3 %v1300_v29  ;;  %710 = vmatpush.msra.mxu0 %v1305_v30 }
 0x2f2   :  { %733 = vmatpush.msra.mxu1 %v1479_v48 }
 0x2f3   :  { %690 = vmatpush.msra.mxu3 %v1314_v31  ;;  %711 = vmatpush.msra.mxu0 %v1319_v32 }
 0x2f4   :  { %734 = vmatpush.msra.mxu1 %v1484_v49 }
 0x2f5   :  { %691 = vmatpush.msra.mxu3 %v1327_v33  ;;  %712 = vmatpush.msra.mxu0 %v1332_v34 }
 0x2f6   :  { %735 = vmatpush.msra.mxu1 %v1491_v50 }
 0x2f7   :  { %692 = vmatpush.msra.mxu3 %v1340_v35  ;;  %713 = vmatpush.msra.mxu0 %v1345_v36  ;;  %v1953_v36 = vld [vmem:[#allocation6_spill] sm:$0xff] }
 0x2f8   :  { %736 = vmatpush.msra.mxu1 %v1498_v51 }
 0x2f9   :  { %714 = vmatpush.msra.mxu0 %v1353_v37  ;;  %v15_v37 = vstv %s1948_s7 }
 0x2fa   :  { %16 = vst [vmem:[#allocation5] sm:$0x1] %v15_v37 }
 0x2fb   :  { %715 = vmatpush.msra.mxu0 %v1362_v39  ;;  %v165_v39 = vadd.f32 %v1511_v53, %v1720_v5 }
 0x2fd   :  { %716 = vmatpush.msra.mxu0 %v1370_v40 }
 0x301   :  { %v1895_v48 = vld [vmem:[#allocation5] ss:$0 sm:$0xff] }
 0x355   :  { %v552_v1 = vpop.f32.mrf.mxu1 }
 0x356   :  { %v555_v2 = vadd.f32 %v552_v1, %v159_v0 }
 0x358   :  { %1027 = vtanh.f32 %v555_v2 }
 0x35b   :  { %v505_v3 = vpop.f32.mrf.mxu3  ;;  %v525_v7 = vpop.f32.mrf.mxu0 }
 0x35c   :  { %v506_v6 = vadd.f32 %v1571_v38, %v505_v3 }
 0x35e   :  { %v1028_v8 = vpop.eup %1027  ;;  %v526_v9 = vadd.f32 %v525_v7, %v506_v6 }
 0x35f   :  { %575 = vmatmul.f32.vlgmr.msrb.gmra.mxu2 %v1028_v8  ;;  %622 = vmatmul.f32.vlgmr.msrb.gmra.mxu0 %v1028_v8 }
 0x360   :  { %1029 = vtanh.f32 %v526_v9  ;;  %773 = vmatpush.msrb.mxu2 %v768_v11 }
 0x362   :  { %774 = vmatpush.msrb.mxu2 %v767_v12 }
 0x364   :  { %775 = vmatpush.msrb.mxu2 %v766_v13 }
 0x366   :  { %v1030_v10 = vpop.eup %1029  ;;  %776 = vmatpush.msrb.mxu2 %v765_v14 }
 0x367   :  { %595 = vmatmul.f32.vlgmr.msrb.gmra.mxu3 %v1030_v10 }
 0x368   :  { %777 = vmatpush.msrb.mxu2 %v764_v15 }
 0x36a   :  { %778 = vmatpush.msrb.mxu2 %v763_v16 }
 0x36c   :  { %779 = vmatpush.msrb.mxu2 %v762_v17 }
 0x36e   :  { %780 = vmatpush.msrb.mxu2 %v761_v18 }
 0x370   :  { %781 = vmatpush.msrb.mxu2 %v760_v19 }
 0x372   :  { %782 = vmatpush.msrb.mxu2 %v759_v20 }
 0x374   :  { %783 = vmatpush.msrb.mxu2 %v758_v21 }
 0x376   :  { %784 = vmatpush.msrb.mxu2 %v757_v22 }
 0x378   :  { %785 = vmatpush.msrb.mxu2 %v756_v23 }
 0x37a   :  { %786 = vmatpush.msrb.mxu2 %v755_v24 }
 0x37c   :  { %787 = vmatpush.msrb.mxu2 %v754_v25 }
 0x37e   :  { %788 = vmatpush.msrb.mxu2 %v753_v26 }
 0x3dc   :  { %v623_v28 = vpop.f32.mrf.mxu0 }
 0x3dd   :  { %v626_v29 = vadd.f32 %v623_v28, %v162_v27 }
 0x3df   :  { %1031 = vtanh.f32 %v626_v29 }
 0x3e2   :  { %v576_v31 = vpop.f32.mrf.mxu2 }
 0x3e3   :  { %v577_v32 = vadd.f32 %v1571_v38, %v576_v31 }
 0x3e5   :  { %v1032_v30 = vpop.eup %1031 }
 0x3e6   :  { %646 = vmatmul.f32.vlgmr.msrb.gmra.mxu1 %v1032_v30  ;;  %693 = vmatmul.f32.vlgmr.msra.gmra.mxu3 %v1032_v30 }
 0x3ea   :  { %v596_v33 = vpop.f32.mrf.mxu3 }
 0x3eb   :  { %v597_v34 = vadd.f32 %v596_v33, %v577_v32 }
 0x3ed   :  { %1033 = vtanh.f32 %v597_v34 }
 0x3f3   :  { %v1034_v35 = vpop.eup %1033 }
 0x3f4   :  { %666 = vmatmul.f32.vlgmr.msra.gmra.mxu2 %v1034_v35 }
 0x3fc   :  { %789 = vmatmul.f32.vlgmr.msrb.gmra.mxu2 %v1580_v55 }
 0x404   :  { %792 = vmatmul.f32.gmra.mxu2 %v1953_v36 }
 0x40c   :  { %795 = vmatmul.f32.gmra.mxu2 %v1733_v61 }
 0x414   :  { %798 = vmatmul.f32.gmra.mxu2 %v1781_v58 }
 0x41c   :  { %801 = vmatmul.f32.gmra.mxu2 %v1030_v10 }
 0x424   :  { %804 = vmatmul.f32.gmra.mxu2 %v1034_v35 }
 0x463   :  { %v647_v43 = vpop.f32.mrf.mxu1 }
 0x464   :  { %v648_v44 = vadd.f32 %v1571_v38, %v647_v43 }
 0x469   :  { %v694_v40 = vpop.f32.mrf.mxu3 }
 0x46a   :  { %v697_v41 = vadd.f32 %v694_v40, %v165_v39 }
 0x46c   :  { %1035 = vtanh.f32 %v697_v41 }
 0x472   :  { %v1036_v42 = vpop.eup %1035 }
 0x473   :  { %977 = vst [vmem:[%s1949_s9] sm:$0xff] %v1036_v42  ;;  %717 = vmatmul.f32.vlgmr.msra.gmra.mxu0 %v1036_v42 }
 0x477   :  { %v667_v46 = vpop.f32.mrf.mxu2 }
 0x478   :  { %v668_v47 = vadd.f32 %v667_v46, %v648_v44 }
 0x47a   :  { %1037 = vtanh.f32 %v668_v47 }
 0x47f   :  { %v790_v49 = vpop.f32.mrf.mxu2 }
 0x480   :  { %v1038_v50 = vpop.eup %1037  ;;  %v791_v51 = vadd.f32 %v1895_v48, %v790_v49 }
 0x481   :  { %737 = vmatmul.f32.vlgmr.msra.gmra.mxu1 %v1038_v50  ;;  %807 = vmatmul.f32.gmra.mxu2 %v1038_v50 }
 0x482   :  { %v996_v53 = vmul.f32 -1.442695, %v791_v51 }
 0x484   :  { %1039 = vpow2.f32 %v996_v53 }
 0x487   :  { %v793_v55 = vpop.f32.mrf.mxu2 }
 0x488   :  { %v794_v59 = vadd.f32 %v1895_v48, %v793_v55 }
 0x48a   :  { %v1040_v60 = vpop.eup %1039  ;;  %v997_v5 = vmul.f32 -1.442695, %v794_v59 }
 0x48b   :  { %v838_v61 = vadd.f32 1.0, %v1040_v60 }
 0x48c   :  { %1041 = vpow2.f32 %v997_v5 }
 0x48d   :  { %1043 = vrcp.f32 %v838_v61  ;;  %v857_v58 = vand.u32 2147483648, %v838_v61  ;;  %v855_v2 = vand.u32 2147483647, %v838_v61  ;;  %vm851_vm3 = vweird.f32 %v838_v61 }
 0x48f   :  { %v796_v57 = vpop.f32.mrf.mxu2  ;;  %v858_v10 = vor.u32 1.1754944e-38, %v857_v58  ;;  %vm856_vm6 = vcmp.eq.f32.partialorder %v855_v2, 8.507059e+37 }
 0x490   :  { %v797_v62 = vadd.f32 %v1895_v48, %v796_v57 }
 0x492   :  { %v1042_v63 = vpop.eup %1041  ;;  %v998_v4 = vmul.f32 -1.442695, %v797_v62 }
 0x493   :  { %v1044_v45 = vpop.eup %1043  ;;  %v839_v52 = vadd.f32 1.0, %v1042_v63 }
 0x494   :  { %v847_v54 = vmul.f32 %v1044_v45, %v838_v61  ;;  %1045 = vpow2.f32 %v998_v4  ;;  %vm852_vm2 = vweird.f32 %v1044_v45 }
 0x495   :  { %1047 = vrcp.f32 %v839_v52  ;;  %vm853_vm4 = vmor %vm851_vm3, %vm852_vm2  ;;  %v872_v16 = vand.u32 2147483648, %v839_v52  ;;  %v870_v19 = vand.u32 2147483647, %v839_v52  ;;  %vm866_vm8 = vweird.f32 %v839_v52 }
 0x496   :  { %v848_v56 = vsub.f32 1.0, %v847_v54 }
 0x497   :  { %v799_v0 = vpop.f32.mrf.mxu2  ;;  %v873_v25 = vor.u32 1.1754944e-38, %v872_v16  ;;  %vm871_vm10 = vcmp.eq.f32.partialorder %v870_v19, 8.507059e+37 }
 0x498   :  { %v849_v1 = vmul.f32 %v1044_v45, %v848_v56  ;;  %v800_v3 = vadd.f32 %v1895_v48, %v799_v0 }
 0x49a   :  { %v1046_v6 = vpop.eup %1045  ;;  %v850_v7 = vadd.f32 %v1044_v45, %v849_v1  ;;  %v999_v8 = vmul.f32 -1.442695, %v800_v3 }
 0x49b   :  { %v1048_v9 = vpop.eup %1047  ;;  %v840_v11 = vadd.f32 1.0, %v1046_v6 }
 0x49c   :  { %v854_v12 = vsel %vm853_vm4, %v1044_v45, %v850_v7  ;;  %v862_v13 = vmul.f32 %v1048_v9, %v839_v52  ;;  %1049 = vpow2.f32 %v999_v8  ;;  %vm867_vm7 = vweird.f32 %v1048_v9 }
 0x49d   :  { %v859_v14 = vsel %vm856_vm6, %v858_v10, %v854_v12  ;;  %1051 = vrcp.f32 %v840_v11  ;;  %vm868_vm9 = vmor %vm866_vm8, %vm867_vm7  ;;  %v887_v31 = vand.u32 2147483648, %v840_v11  ;;  %v885_v34 = vand.u32 2147483647, %v840_v11 }
 0x49e   :  { %967 = vst.msk [vmem:[%s1950_s8] sm:$0xff] %vm966_vm5, %v859_v14  ;;  %v863_v15 = vsub.f32 1.0, %v862_v13  ;;  %vm881_vm12 = vweird.f32 %v840_v11 }
 0x49f   :  { %v802_v17 = vpop.f32.mrf.mxu2  ;;  %v888_v41 = vor.u32 1.1754944e-38, %v887_v31  ;;  %vm886_vm14 = vcmp.eq.f32.partialorder %v885_v34, 8.507059e+37 }
 0x4a0   :  { %v864_v18 = vmul.f32 %v1048_v9, %v863_v15  ;;  %v803_v20 = vadd.f32 %v1895_v48, %v802_v17 }
 0x4a2   :  { %v1050_v21 = vpop.eup %1049  ;;  %v865_v22 = vadd.f32 %v1048_v9, %v864_v18  ;;  %v1000_v23 = vmul.f32 -1.442695, %v803_v20 }
 0x4a3   :  { %v1052_v24 = vpop.eup %1051  ;;  %v841_v26 = vadd.f32 1.0, %v1050_v21 }
 0x4a4   :  { %v869_v27 = vsel %vm868_vm9, %v1048_v9, %v865_v22  ;;  %v877_v28 = vmul.f32 %v1052_v24, %v840_v11  ;;  %1053 = vpow2.f32 %v1000_v23  ;;  %vm882_vm11 = vweird.f32 %v1052_v24 }
 0x4a5   :  { %v874_v29 = vsel %vm871_vm10, %v873_v25, %v869_v27  ;;  %1055 = vrcp.f32 %v841_v26  ;;  %vm883_vm13 = vmor %vm881_vm12, %vm882_vm11  ;;  %v902_v49 = vand.u32 2147483648, %v841_v26  ;;  %v900_v51 = vand.u32 2147483647, %v841_v26 }
 0x4a6   :  { %968 = vst.msk [vmem:[%s1950_s8 + $0x8] sm:$0xff] %vm966_vm5, %v874_v29  ;;  %v878_v30 = vsub.f32 1.0, %v877_v28  ;;  %vm896_vm0 = vweird.f32 %v841_v26 }
 0x4a7   :  { %v805_v32 = vpop.f32.mrf.mxu2  ;;  %v903_v60 = vor.u32 1.1754944e-38, %v902_v49  ;;  %vm901_vm2 = vcmp.eq.f32.partialorder %v900_v51, 8.507059e+37 }
 0x4a8   :  { %v879_v33 = vmul.f32 %v1052_v24, %v878_v30  ;;  %v806_v35 = vadd.f32 %v1895_v48, %v805_v32 }
 0x4aa   :  { %v1054_v36 = vpop.eup %1053  ;;  %v880_v37 = vadd.f32 %v1052_v24, %v879_v33  ;;  %v1001_v39 = vmul.f32 -1.442695, %v806_v35 }
 0x4ab   :  { %v1056_v40 = vpop.eup %1055  ;;  %v842_v42 = vadd.f32 1.0, %v1054_v36 }
 0x4ac   :  { %v884_v43 = vsel %vm883_vm13, %v1052_v24, %v880_v37  ;;  %v892_v44 = vmul.f32 %v1056_v40, %v841_v26  ;;  %1057 = vpow2.f32 %v1001_v39  ;;  %vm897_vm15 = vweird.f32 %v1056_v40 }
 0x4ad   :  { %v889_v46 = vsel %vm886_vm14, %v888_v41, %v884_v43  ;;  %1059 = vrcp.f32 %v842_v42  ;;  %vm898_vm1 = vmor %vm896_vm0, %vm897_vm15  ;;  %v917_v4 = vand.u32 2147483648, %v842_v42  ;;  %v915_v52 = vand.u32 2147483647, %v842_v42 }
 0x4ae   :  { %969 = vst.msk [vmem:[%s1950_s8 + $0x10] sm:$0xff] %vm966_vm5, %v889_v46  ;;  %v893_v47 = vsub.f32 1.0, %v892_v44  ;;  %vm911_vm4 = vweird.f32 %v842_v42 }
 0x4af   :  { %v918_v58 = vor.u32 1.1754944e-38, %v917_v4  ;;  %vm916_vm7 = vcmp.eq.f32.partialorder %v915_v52, 8.507059e+37 }
 0x4b0   :  { %v894_v50 = vmul.f32 %v1056_v40, %v893_v47 }
 0x4b2   :  { %v1058_v53 = vpop.eup %1057  ;;  %v895_v55 = vadd.f32 %v1056_v40, %v894_v50 }
 0x4b3   :  { %v1060_v59 = vpop.eup %1059  ;;  %v843_v5 = vadd.f32 1.0, %v1058_v53 }
 0x4b4   :  { %v899_v61 = vsel %vm898_vm1, %v1056_v40, %v895_v55  ;;  %v907_v57 = vmul.f32 %v1060_v59, %v842_v42  ;;  %vm912_vm3 = vweird.f32 %v1060_v59 }
 0x4b5   :  { %v904_v62 = vsel %vm901_vm2, %v903_v60, %v899_v61  ;;  %1061 = vrcp.f32 %v843_v5  ;;  %vm913_vm6 = vmor %vm911_vm4, %vm912_vm3  ;;  %v932_v6 = vand.u32 2147483648, %v843_v5  ;;  %v930_v8 = vand.u32 2147483647, %v843_v5 }
 0x4b6   :  { %970 = vst.msk [vmem:[%s1950_s8 + $0x18] sm:$0xff] %vm966_vm5, %v904_v62  ;;  %v908_v63 = vsub.f32 1.0, %v907_v57  ;;  %vm926_vm9 = vweird.f32 %v843_v5 }
 0x4b7   :  { %v933_v10 = vor.u32 1.1754944e-38, %v932_v6  ;;  %vm931_vm11 = vcmp.eq.f32.partialorder %v930_v8, 8.507059e+37 }
 0x4b8   :  { %v909_v45 = vmul.f32 %v1060_v59, %v908_v63 }
 0x4ba   :  { %v910_v54 = vadd.f32 %v1060_v59, %v909_v45 }
 0x4bb   :  { %v1062_v56 = vpop.eup %1061 }
 0x4bc   :  { %v914_v0 = vsel %vm913_vm6, %v1060_v59, %v910_v54  ;;  %v922_v1 = vmul.f32 %v1062_v56, %v843_v5  ;;  %vm927_vm8 = vweird.f32 %v1062_v56 }
 0x4bd   :  { %v919_v2 = vsel %vm916_vm7, %v918_v58, %v914_v0  ;;  %vm928_vm10 = vmor %vm926_vm9, %vm927_vm8 }
 0x4be   :  { %971 = vst.msk [vmem:[%s1950_s8 + $0x20] sm:$0xff] %vm966_vm5, %v919_v2  ;;  %v923_v3 = vsub.f32 1.0, %v922_v1 }
 0x4c0   :  { %v924_v7 = vmul.f32 %v1062_v56, %v923_v3 }
 0x4c2   :  { %v925_v9 = vadd.f32 %v1062_v56, %v924_v7 }
 0x4c4   :  { %v929_v11 = vsel %vm928_vm10, %v1062_v56, %v925_v9 }
 0x4c5   :  { %v934_v12 = vsel %vm931_vm11, %v933_v10, %v929_v11 }
 0x4c6   :  { %972 = vst.msk [vmem:[%s1950_s8 + $0x28] sm:$0xff] %vm966_vm5, %v934_v12 }
 0x4f0   :  { %v718_v13 = vpop.f32.mrf.mxu0 }
 0x4f1   :  { %v719_v14 = vadd.f32 %v1571_v38, %v718_v13 }
 0x4fe   :  { %v738_v15 = vpop.f32.mrf.mxu1 }
 0x4ff   :  { %v739_v16 = vadd.f32 %v738_v15, %v719_v14 }
 0x501   :  { %1063 = vtanh.f32 %v739_v16 }
 0x504   :  { %v808_v17 = vpop.f32.mrf.mxu2 }
 0x505   :  { %v809_v18 = vadd.f32 %v1895_v48, %v808_v17 }
 0x507   :  { %v1064_v19 = vpop.eup %1063  ;;  %v1002_v20 = vmul.f32 -1.442695, %v809_v18 }
 0x508   :  { %978 = vst [vmem:[%s1949_s9 + $0x8] sm:$0xff] %v1064_v19  ;;  %810 = vmatmul.f32.gmra.mxu2 %v1064_v19 }
 0x509   :  { %1065 = vpow2.f32 %v1002_v20 }
 0x50f   :  { %v1066_v21 = vpop.eup %1065 }
 0x510   :  { %v844_v22 = vadd.f32 1.0, %v1066_v21 }
 0x512   :  { %1067 = vrcp.f32 %v844_v22  ;;  %v947_v25 = vand.u32 2147483648, %v844_v22  ;;  %v945_v27 = vand.u32 2147483647, %v844_v22  ;;  %vm941_vm13 = vweird.f32 %v844_v22 }
 0x514   :  { %v948_v29 = vor.u32 1.1754944e-38, %v947_v25  ;;  %vm946_vm15 = vcmp.eq.f32.partialorder %v945_v27, 8.507059e+37 }
 0x518   :  { %v1068_v23 = vpop.eup %1067 }
 0x519   :  { %v937_v24 = vmul.f32 %v1068_v23, %v844_v22  ;;  %vm942_vm12 = vweird.f32 %v1068_v23 }
 0x51a   :  { %vm943_vm14 = vmor %vm941_vm13, %vm942_vm12 }
 0x51b   :  { %v938_v38 = vsub.f32 1.0, %v937_v24 }
 0x51d   :  { %v939_v26 = vmul.f32 %v1068_v23, %v938_v38 }
 0x51f   :  { %v940_v28 = vadd.f32 %v1068_v23, %v939_v26 }
 0x521   :  { %v944_v30 = vsel %vm943_vm14, %v1068_v23, %v940_v28 }
 0x522   :  { %v949_v31 = vsel %vm946_vm15, %v948_v29, %v944_v30 }
 0x523   :  { %973 = vst.msk [vmem:[%s1950_s8 + $0x30] sm:$0xff] %vm966_vm5, %v949_v31 }
 0x58b   :  { %v811_v32 = vpop.f32.mrf.mxu2 }
 0x58c   :  { %v812_v33 = vadd.f32 %v1895_v48, %v811_v32 }
 0x58e   :  { %v1003_v34 = vmul.f32 -1.442695, %v812_v33 }
 0x590   :  { %1069 = vpow2.f32 %v1003_v34 }
 0x596   :  { %v1070_v35 = vpop.eup %1069 }
 0x597   :  { %v845_v36 = vadd.f32 1.0, %v1070_v35 }
 0x599   :  { %1071 = vrcp.f32 %v845_v36  ;;  %v962_v41 = vand.u32 2147483648, %v845_v36  ;;  %v960_v43 = vand.u32 2147483647, %v845_v36  ;;  %vm956_vm1 = vweird.f32 %v845_v36 }
 0x59b   :  { %v963_v46 = vor.u32 1.1754944e-38, %v962_v41  ;;  %vm961_vm3 = vcmp.eq.f32.partialorder %v960_v43, 8.507059e+37 }
 0x59f   :  { %v1072_v37 = vpop.eup %1071 }
 0x5a0   :  { %v952_v39 = vmul.f32 %v1072_v37, %v845_v36  ;;  %vm957_vm0 = vweird.f32 %v1072_v37 }
 0x5a1   :  { %vm958_vm2 = vmor %vm956_vm1, %vm957_vm0 }
 0x5a2   :  { %v953_v40 = vsub.f32 1.0, %v952_v39 }
 0x5a4   :  { %v954_v42 = vmul.f32 %v1072_v37, %v953_v40 }
 0x5a6   :  { %v955_v44 = vadd.f32 %v1072_v37, %v954_v42 }
 0x5a8   :  { %v959_v47 = vsel %vm958_vm2, %v1072_v37, %v955_v44 }
 0x5a9   :  { %v964_v49 = vsel %vm961_vm3, %v963_v46, %v959_v47 }
 0x5aa   :  { %974 = vst.msk [vmem:[%s1950_s8 + $0x38] sm:$0xff] %vm966_vm5, %v964_v49 }

</bundles_post_ra>
